<compile_context>
chip_gen: v7x
topology: tpu7x:2x2x1
jax: 0.10.0
libtpu: 0.0.40
codegen_flags: <defaults>
</compile_context>

<pallas_src>
import jax
import jax.numpy as jnp
from jax.experimental import pallas as pl
from jax.experimental.pallas import tpu as pltpu

DIM_MID = 256  # fixed hidden width in the PyTorch module


# ----------------------------------------------------------------------------
# Fused kernel: per (batch n, row-tile r)
#   hid = relu(x @ w1 + b1) on a (th+2)-row halo window (halo rows zeroed at
#   the image edges), kept in a persistent VMEM scratch, then
#   out = relu(conv3x3(hid) + b2) via 3 kw-packed matmuls + rolled adds.
# ----------------------------------------------------------------------------
def _corr_encoder_kernel(x_ref, w1_ref, b1_ref, w2p_ref, b2_ref, o_ref, hid_ref):
    # x_ref  : (1, H+2, W, Cin)   bf16  H-padded NHWC input, full image of batch n
    # w1_ref : (Cin, Cmid)        bf16
    # b1_ref : (1, Cmid)          f32
    # w2p_ref: (3, Cmid, 3*Cout)  bf16  packed as [kh, ci, kw*Cout + co]
    # b2_ref : (1, Cout)          f32
    # o_ref  : (1, th, W, Cout)   f32   NHWC output rows of this tile
    # hid_ref: ((th+2)*W, Cmid)   bf16  VMEM scratch: hidden slab incl. row halo
    H = x_ref.shape[1] - 2
    W = x_ref.shape[2]
    Cin = x_ref.shape[3]
    Cmid = w1_ref.shape[1]
    Cout = b2_ref.shape[1]
    th = o_ref.shape[1]

    r = pl.program_id(1)
    rstart = pl.multiple_of(r * th, th)

    # ---- stage 1: 1x1 conv + bias + relu on the (th+2)-row halo window -------
    xwin = x_ref[0, pl.ds(rstart, th + 2), :, :]            # (th+2, W, Cin)
    xflat = xwin.reshape((th + 2) * W, Cin)
    hid = jnp.dot(xflat, w1_ref[...], preferred_element_type=jnp.float32)
    hid = jnp.maximum(hid + b1_ref[...], 0.0)
    hid_ref[...] = hid.astype(jnp.bfloat16)

    # conv2's zero padding: halo rows outside the image must be exactly 0 (not
    # relu(b1)).  Only edge tiles pay this, and only one (W, Cmid) row each.
    @pl.when(r == 0)
    def _():
        hid_ref[0:W, :] = jnp.zeros((W, Cmid), jnp.bfloat16)

    @pl.when(r == pl.num_programs(1) - 1)
    def _():
        hid_ref[(th + 1) * W:(th + 2) * W, :] = jnp.zeros((W, Cmid), jnp.bfloat16)

    # ---- stage 2: 3x3 conv (padding=1), kw packed along the MXU N dim --------
    # q[y*W+x, kw*Cout+co] = sum_ci hid[(y+kh)*W + x, ci] * w2[kh, kw, ci, co]
    q = None
    for kh in range(3):
        lhs = hid_ref[kh * W:(kh + th) * W, :]              # aligned sublane slice
        contrib = jnp.dot(lhs, w2p_ref[kh], preferred_element_type=jnp.float32)
        q = contrib if q is None else q + contrib           # (th*W, 3*Cout) f32

    # kw = -1 / +1 taps: shift the matmul result one column via pltpu.roll on
    # the flattened (y, x) axis (cyclic), then mask the image edge columns
    # (which also kills the cross-row wrap positions).
    n_rows = th * W
    xcol = jax.lax.broadcasted_iota(jnp.int32, (n_rows, 1), 0) % W
    center = q[:, Cout:2 * Cout]
    left = jnp.where(xcol != 0,
                     pltpu.roll(q[:, 0:Cout], 1, axis=0), 0.0)
    right = jnp.where(xcol != W - 1,
                      pltpu.roll(q[:, 2 * Cout:3 * Cout], n_rows - 1, axis=0), 0.0)

    out = jnp.maximum(center + left + right + b2_ref[...], 0.0)   # (th*W, Cout)
    o_ref[...] = out.reshape(1, th, W, Cout).astype(o_ref.dtype)


def _choose_row_tile(H, W, cmid=DIM_MID, slab_budget_bytes=6 << 20):
    # Whole image per step when the hidden slab fits comfortably in VMEM,
    # otherwise the largest divisor of H from a descending candidate list.
    if (H + 2) * W * cmid * 2 <= slab_budget_bytes:
        return H
    for cand in (256, 128, 64, 32, 16, 8):
        if H % cand == 0 and (cand + 2) * W * cmid * 2 <= slab_budget_bytes:
            return cand
    # TODO(synk): pad H in the wrapper when it has no suitable divisor.
    return H


def _vmem_limit_bytes(H, W, Cin, Cmid, Cout, th):
    # Explicit VMEM budget (v7x default scoped is 32 MiB / 64 MiB physical).
    pad = lambda c: -(-c // 128) * 128              # lane padding
    need = (2 * (H + 2) * W * pad(Cin) * 2          # x block, double-buffered, bf16
            + (th + 2) * W * Cmid * 2               # hidden slab scratch, bf16
            + 2 * th * W * pad(Cout) * 4            # out block, double-buffered, f32
            + Cin * Cmid * 2                        # w1
            + 3 * Cmid * pad(3 * Cout) * 2          # w2 packed
            + 2 * 2 * 8 * 128 * 4)                  # biases (padded) x2 buffers
    return int(min(max(2 * need + (2 << 20), 32 << 20), 56 << 20))


def _fused_call(x_pad_nhwc, w1, b1, w2p, b2, *, H, W, th):
    N = x_pad_nhwc.shape[0]
    Cin = x_pad_nhwc.shape[3]
    Cmid = w1.shape[1]
    Cout = b2.shape[1]
    R = H // th
    return pl.pallas_call(
        _corr_encoder_kernel,
        out_shape=jax.ShapeDtypeStruct((N, H, W, Cout), jnp.float32),
        grid_spec=pltpu.PrefetchScalarGridSpec(
            num_scalar_prefetch=0,
            grid=(N, R),
            in_specs=[
                # Full padded image of batch n; constant over r, and with the r
                # axis "arbitrary"/sequential it is DMA'd once per batch.
                pl.BlockSpec((1, H + 2, W, Cin), lambda n, r: (n, 0, 0, 0)),
                pl.BlockSpec((Cin, Cmid), lambda n, r: (0, 0)),
                pl.BlockSpec((1, Cmid), lambda n, r: (0, 0)),
                pl.BlockSpec((3, Cmid, 3 * Cout), lambda n, r: (0, 0, 0)),
                pl.BlockSpec((1, Cout), lambda n, r: (0, 0)),
            ],
            out_specs=pl.BlockSpec((1, th, W, Cout), lambda n, r: (n, r, 0, 0)),
            scratch_shapes=[pltpu.VMEM(((th + 2) * W, Cmid), jnp.bfloat16)],
        ),
        compiler_params=pltpu.CompilerParams(
            # Batch axis parallel (shards across v7x's 2 TCs); row-tile axis
            # arbitrary so the constant-over-r input block stays resident.
            dimension_semantics=("parallel", "arbitrary"),
            vmem_limit_bytes=_vmem_limit_bytes(H, W, Cin, Cmid, Cout, th),
        ),
    )(x_pad_nhwc, w1, b1, w2p, b2)


# ----------------------------------------------------------------------------
# CorrEncoder forward: NCHW in, NCHW out (PyTorch convention).
# ----------------------------------------------------------------------------
def corr_encoder(corr_nchw, params, *, th=None):
    w1, b1, w2p, b2 = params     # w1:(Cin,256) bf16, b1:(1,256) f32,
                                 # w2p:(3,256,3*Cout) bf16, b2:(1,Cout) f32
    N, Cin, H, W = corr_nchw.shape
    if th is None:
        th = _choose_row_tile(H, W)

    # NCHW -> NHWC, bf16 cast, 1-row zero halo along H.  Only the small
    # Cin-channel input is touched here; the 256-channel hidden map never
    # leaves VMEM.
    # TODO(synk): for tiny Cin (e.g. 4) the (W, Cin) VMEM layout lane-pads Cin
    # to 128; pack Cin with W into the lane dim (or do the 1x1 as VPU FMAs) if
    # that ever matters — real corr inputs have Cin ~196-324.
    # TODO(synk): W not a multiple of 8/16 makes some in-kernel reshapes/slices
    # materialize relayouts (correct but slower); pad W in the wrapper then.
    x = jnp.transpose(corr_nchw, (0, 2, 3, 1)).astype(jnp.bfloat16)
    x = jnp.pad(x, ((0, 0), (1, 1), (0, 0), (0, 0)))

    y = _fused_call(x, w1, b1, w2p, b2, H=H, W=W, th=th)      # (N, H, W, Cout)
    # TODO(synk): keep the surrounding model NHWC end-to-end to drop this pass.
    return jnp.transpose(y, (0, 3, 1, 2))


def init_params(key, dim_in, dim_out):
    k1, k2, k3, k4 = jax.random.split(key, 4)
    # PyTorch conv weight layout is (out, in, kh, kw); we store MXU-ready forms.
    w1_t = 0.05 * jax.random.normal(k1, (DIM_MID, dim_in, 1, 1), jnp.float32)
    b1 = 0.05 * jax.random.normal(k2, (DIM_MID,), jnp.float32)
    w2_t = 0.05 * jax.random.normal(k3, (dim_out, DIM_MID, 3, 3), jnp.float32)
    b2 = 0.05 * jax.random.normal(k4, (dim_out,), jnp.float32)

    w1 = jnp.transpose(w1_t[:, :, 0, 0], (1, 0)).astype(jnp.bfloat16)   # (Cin,256)
    w2_khkw = jnp.transpose(w2_t, (2, 3, 1, 0))                          # (kh,kw,Cmid,Cout)
    # kw taps packed along the matmul N dim: w2p[kh, ci, kw*Cout + co].
    w2p = jnp.transpose(w2_khkw, (0, 2, 1, 3)).reshape(3, DIM_MID, 3 * dim_out)
    w2p = w2p.astype(jnp.bfloat16)

    params = (w1, b1.reshape(1, DIM_MID), w2p, b2.reshape(1, dim_out))
    torch_params = (w1_t, b1, w2_t, b2)
    return params, torch_params


def _reference(corr_nchw, torch_style_params):
    # Pure-JAX reference using lax.conv (same semantics as the PyTorch module).
    w1_t, b1, w2_t, b2 = torch_style_params
    x = jnp.transpose(corr_nchw, (0, 2, 3, 1))
    w1_hwio = jnp.transpose(w1_t, (2, 3, 1, 0))
    w2_hwio = jnp.transpose(w2_t, (2, 3, 1, 0))
    dn = ("NHWC", "HWIO", "NHWC")
    h = jax.lax.conv_general_dilated(x, w1_hwio, (1, 1), "SAME",
                                     dimension_numbers=dn) + b1
    h = jnp.maximum(h, 0.0)
    y = jax.lax.conv_general_dilated(h, w2_hwio, (1, 1), "SAME",
                                     dimension_numbers=dn) + b2
    y = jnp.maximum(y, 0.0)
    return jnp.transpose(y, (0, 3, 1, 2))


if __name__ == "__main__":
    key = jax.random.PRNGKey(0)
    dim_in, dim_out = 4, 32
    N, H, W = 2, 16, 16

    kx, kp = jax.random.split(key)
    corr = jax.random.normal(kx, (N, dim_in, H, W), jnp.float32)
    params, torch_params = init_params(kp, dim_in, dim_out)

    out = corr_encoder(corr, params)
    out = jax.block_until_ready(out)

    ref = _reference(corr, torch_params)
    assert out.shape == (N, dim_out, H, W), out.shape
    # bf16 MXU inputs / f32 accumulation -> ~1e-2 relative vs the f32 reference.
    assert jnp.allclose(out, ref, rtol=2e-2, atol=2e-2), float(
        jnp.max(jnp.abs(out - ref)))

    print("KERNEL_OK")
</pallas_src>

<mosaic_0001>
module attributes {stable_mosaic.version = 11 : i64} {
  func.func @_corr_encoder_kernel(%arg0: i32, %arg1: i32, %arg2: memref<1x18x16x4xbf16, #tpu.memory_space<vmem>>, %arg3: memref<4x256xbf16, #tpu.memory_space<vmem>>, %arg4: memref<1x256xf32, #tpu.memory_space<vmem>>, %arg5: memref<3x256x96xbf16, #tpu.memory_space<vmem>>, %arg6: memref<1x32xf32, #tpu.memory_space<vmem>>, %arg7: memref<1x16x16x32xf32, #tpu.memory_space<vmem>>, %arg8: memref<288x256xbf16, #tpu.memory_space<vmem>>) attributes {dimension_semantics = [#tpu.dimension_semantics<parallel>, #tpu.dimension_semantics<arbitrary>], iteration_bounds = array<i64: 2, 1>, scalar_prefetch = 0 : i64, scratch_operands = 1 : i64, tpu.core_type = #tpu.core_type<tc>, window_params = [{transform_indices = @transform_0, window_bounds = array<i64: 1, 18, 16, 4>}, {pipeline_mode = #tpu.pipeline_mode<synchronous>, transform_indices = @transform_1, window_bounds = array<i64: 4, 256>}, {pipeline_mode = #tpu.pipeline_mode<synchronous>, transform_indices = @transform_2, window_bounds = array<i64: 1, 256>}, {pipeline_mode = #tpu.pipeline_mode<synchronous>, transform_indices = @transform_3, window_bounds = array<i64: 3, 256, 96>}, {pipeline_mode = #tpu.pipeline_mode<synchronous>, transform_indices = @transform_4, window_bounds = array<i64: 1, 32>}, {transform_indices = @transform_5, window_bounds = array<i64: 1, 16, 16, 32>}]} {
    %c16_i32 = arith.constant 16 : i32
    %0 = arith.muli %arg1, %c16_i32 : i32
    %1 = tpu.assume_multiple %0, 16 : i32
    %c0 = arith.constant 0 : index
    %2 = arith.index_cast %1 : i32 to index
    %c0_0 = arith.constant 0 : index
    %c0_1 = arith.constant 0 : index
    %3 = vector.load %arg2[%c0, %2, %c0_0, %c0_1] : memref<1x18x16x4xbf16, #tpu.memory_space<vmem>>, vector<1x18x16x4xbf16>
    %4 = vector.shape_cast %3 : vector<1x18x16x4xbf16> to vector<18x16x4xbf16>
    %5 = vector.shape_cast %4 : vector<18x16x4xbf16> to vector<288x4xbf16>
    %c0_2 = arith.constant 0 : index
    %c0_3 = arith.constant 0 : index
    %6 = vector.load %arg3[%c0_2, %c0_3] : memref<4x256xbf16, #tpu.memory_space<vmem>>, vector<4x256xbf16>
    %cst = arith.constant dense<0.000000e+00> : vector<288x256xf32>
    %7 = tpu.matmul %5, %6, %cst {dimension_numbers = #tpu.dot_dimension_numbers<[1], [0], [0], [1], [0, 0, 1, 1], [], []>} : vector<288x4xbf16>, vector<4x256xbf16>, vector<288x256xf32> -> vector<288x256xf32>
    %c0_4 = arith.constant 0 : index
    %c0_5 = arith.constant 0 : index
    %8 = vector.load %arg4[%c0_4, %c0_5] : memref<1x256xf32, #tpu.memory_space<vmem>>, vector<1x256xf32>
    %9 = vector.broadcast %8 : vector<1x256xf32> to vector<288x256xf32>
    %10 = arith.addf %7, %9 : vector<288x256xf32>
    %cst_6 = arith.constant 0.000000e+00 : f32
    %11 = vector.broadcast %cst_6 : f32 to vector<288x256xf32>
    %12 = arith.maximumf %10, %11 : vector<288x256xf32>
    %13 = arith.truncf %12 : vector<288x256xf32> to vector<288x256xbf16>
    %c0_7 = arith.constant 0 : index
    %c0_8 = arith.constant 0 : index
    %14 = vector.load %arg8[%c0_7, %c0_8] : memref<288x256xbf16, #tpu.memory_space<vmem>>, vector<288x256xbf16>
    tpu.vector_store %arg8[%c0_7, %c0_8], %13 {strides = array<i32>} : memref<288x256xbf16, #tpu.memory_space<vmem>>, vector<288x256xbf16>,
    %c0_i32 = arith.constant 0 : i32
    %15 = arith.cmpi eq, %arg1, %c0_i32 : i32
    %16 = arith.extui %15 : i1 to i32
    %c0_i32_9 = arith.constant 0 : i32
    %17 = arith.cmpi ne, %16, %c0_i32_9 : i32
    scf.if %17 {
      %cst_42 = arith.constant 0.000000e+00 : bf16
      %78 = vector.broadcast %cst_42 : bf16 to vector<16x256xbf16>
      %c0_43 = arith.constant 0 : index
      %c0_44 = arith.constant 0 : index
      %79 = vector.load %arg8[%c0_43, %c0_44] : memref<288x256xbf16, #tpu.memory_space<vmem>>, vector<16x256xbf16>
      tpu.vector_store %arg8[%c0_43, %c0_44], %78 {strides = array<i32>} : memref<288x256xbf16, #tpu.memory_space<vmem>>, vector<16x256xbf16>,
    } else {
    }
    %c0_i32_10 = arith.constant 0 : i32
    %18 = arith.cmpi eq, %arg1, %c0_i32_10 : i32
    %19 = arith.extui %18 : i1 to i32
    %c0_i32_11 = arith.constant 0 : i32
    %20 = arith.cmpi ne, %19, %c0_i32_11 : i32
    scf.if %20 {
      %cst_42 = arith.constant 0.000000e+00 : bf16
      %78 = vector.broadcast %cst_42 : bf16 to vector<16x256xbf16>
      %c272 = arith.constant 272 : index
      %c0_43 = arith.constant 0 : index
      %79 = vector.load %arg8[%c272, %c0_43] : memref<288x256xbf16, #tpu.memory_space<vmem>>, vector<16x256xbf16>
      tpu.vector_store %arg8[%c272, %c0_43], %78 {strides = array<i32>} : memref<288x256xbf16, #tpu.memory_space<vmem>>, vector<16x256xbf16>,
    } else {
    }
    %c0_12 = arith.constant 0 : index
    %c0_13 = arith.constant 0 : index
    %21 = vector.load %arg8[%c0_12, %c0_13] : memref<288x256xbf16, #tpu.memory_space<vmem>>, vector<256x256xbf16>
    %c0_14 = arith.constant 0 : index
    %c0_15 = arith.constant 0 : index
    %c0_16 = arith.constant 0 : index
    %22 = vector.load %arg5[%c0_14, %c0_15, %c0_16] : memref<3x256x96xbf16, #tpu.memory_space<vmem>>, vector<1x256x96xbf16>
    %23 = vector.shape_cast %22 : vector<1x256x96xbf16> to vector<256x96xbf16>
    %cst_17 = arith.constant dense<0.000000e+00> : vector<256x96xf32>
    %24 = tpu.matmul %21, %23, %cst_17 {dimension_numbers = #tpu.dot_dimension_numbers<[1], [0], [0], [1], [0, 0, 1, 1], [], []>} : vector<256x256xbf16>, vector<256x96xbf16>, vector<256x96xf32> -> vector<256x96xf32>
    %c16 = arith.constant 16 : index
    %c0_18 = arith.constant 0 : index
    %25 = vector.load %arg8[%c16, %c0_18] : memref<288x256xbf16, #tpu.memory_space<vmem>>, vector<256x256xbf16>
    %c1 = arith.constant 1 : index
    %c0_19 = arith.constant 0 : index
    %c0_20 = arith.constant 0 : index
    %26 = vector.load %arg5[%c1, %c0_19, %c0_20] : memref<3x256x96xbf16, #tpu.memory_space<vmem>>, vector<1x256x96xbf16>
    %27 = vector.shape_cast %26 : vector<1x256x96xbf16> to vector<256x96xbf16>
    %cst_21 = arith.constant dense<0.000000e+00> : vector<256x96xf32>
    %28 = tpu.matmul %25, %27, %cst_21 {dimension_numbers = #tpu.dot_dimension_numbers<[1], [0], [0], [1], [0, 0, 1, 1], [], []>} : vector<256x256xbf16>, vector<256x96xbf16>, vector<256x96xf32> -> vector<256x96xf32>
    %29 = arith.addf %24, %28 : vector<256x96xf32>
    %c32 = arith.constant 32 : index
    %c0_22 = arith.constant 0 : index
    %30 = vector.load %arg8[%c32, %c0_22] : memref<288x256xbf16, #tpu.memory_space<vmem>>, vector<256x256xbf16>
    %c2 = arith.constant 2 : index
    %c0_23 = arith.constant 0 : index
    %c0_24 = arith.constant 0 : index
    %31 = vector.load %arg5[%c2, %c0_23, %c0_24] : memref<3x256x96xbf16, #tpu.memory_space<vmem>>, vector<1x256x96xbf16>
    %32 = vector.shape_cast %31 : vector<1x256x96xbf16> to vector<256x96xbf16>
    %cst_25 = arith.constant dense<0.000000e+00> : vector<256x96xf32>
    %33 = tpu.matmul %30, %32, %cst_25 {dimension_numbers = #tpu.dot_dimension_numbers<[1], [0], [0], [1], [0, 0, 1, 1], [], []>} : vector<256x256xbf16>, vector<256x96xbf16>, vector<256x96xf32> -> vector<256x96xf32>
    %34 = arith.addf %29, %33 : vector<256x96xf32>
    %35 = tpu.iota {dimensions = array<i32: 0>} : vector<256x1xi32>
    %c16_i32_26 = arith.constant 16 : i32
    %c0_i32_27 = arith.constant 0 : i32
    %36 = arith.cmpi eq, %c16_i32_26, %c0_i32_27 : i32
    %c1_i32 = arith.constant 1 : i32
    %37 = arith.select %36, %c1_i32, %c16_i32_26 : i32
    %38 = vector.broadcast %37 : i32 to vector<256x1xi32>
    %39 = arith.remsi %35, %38 : vector<256x1xi32>
    %c0_i32_28 = arith.constant 0 : i32
    %40 = vector.broadcast %c0_i32_28 : i32 to vector<256x1xi32>
    %41 = arith.cmpi ne, %39, %40 : vector<256x1xi32>
    %c0_i32_29 = arith.constant 0 : i32
    %42 = vector.broadcast %c0_i32_29 : i32 to vector<256x1xi32>
    %43 = arith.cmpi slt, %39, %42 : vector<256x1xi32>
    %c0_i32_30 = arith.constant 0 : i32
    %44 = arith.cmpi slt, %37, %c0_i32_30 : i32
    %45 = vector.broadcast %44 : i1 to vector<256x1xi1>
    %46 = vector.broadcast %45 : vector<256x1xi1> to vector<256x1xi1>
    %47 = arith.xori %43, %46 : vector<256x1xi1>
    %48 = arith.andi %47, %41 : vector<256x1xi1>
    %49 = vector.broadcast %37 : i32 to vector<256x1xi32>
    %50 = arith.addi %39, %49 : vector<256x1xi32>
    %51 = arith.select %48, %50, %39 : vector<256x1xi1>, vector<256x1xi32>
    %52 = vector.extract_strided_slice %34 {offsets = [0, 32], sizes = [256, 32], strides = [1, 1]} : vector<256x96xf32> to vector<256x32xf32>
    %c0_i32_31 = arith.constant 0 : i32
    %53 = vector.broadcast %c0_i32_31 : i32 to vector<256x1xi32>
    %54 = arith.cmpi ne, %51, %53 : vector<256x1xi32>
    %55 = vector.extract_strided_slice %34 {offsets = [0, 0], sizes = [256, 32], strides = [1, 1]} : vector<256x96xf32> to vector<256x32xf32>
    %c1_i32_32 = arith.constant 1 : i32
    %56 = tpu.dynamic_rotate %55 by %c1_i32_32 dim 0 : vector<256x32xf32>, i32 -> vector<256x32xf32>
    %cst_33 = arith.constant 0.000000e+00 : f32
    %57 = vector.shape_cast %54 : vector<256x1xi1> to vector<256x1xi1>
    %58 = vector.broadcast %57 : vector<256x1xi1> to vector<256x32xi1>
    %59 = vector.broadcast %cst_33 : f32 to vector<256x32xf32>
    %60 = arith.select %58, %56, %59 : vector<256x32xi1>, vector<256x32xf32>
    %c15_i32 = arith.constant 15 : i32
    %61 = vector.broadcast %c15_i32 : i32 to vector<256x1xi32>
    %62 = arith.cmpi ne, %51, %61 : vector<256x1xi32>
    %63 = vector.extract_strided_slice %34 {offsets = [0, 64], sizes = [256, 32], strides = [1, 1]} : vector<256x96xf32> to vector<256x32xf32>
    %c255_i32 = arith.constant 255 : i32
    %64 = tpu.dynamic_rotate %63 by %c255_i32 dim 0 : vector<256x32xf32>, i32 -> vector<256x32xf32>
    %cst_34 = arith.constant 0.000000e+00 : f32
    %65 = vector.shape_cast %62 : vector<256x1xi1> to vector<256x1xi1>
    %66 = vector.broadcast %65 : vector<256x1xi1> to vector<256x32xi1>
    %67 = vector.broadcast %cst_34 : f32 to vector<256x32xf32>
    %68 = arith.select %66, %64, %67 : vector<256x32xi1>, vector<256x32xf32>
    %69 = arith.addf %52, %60 : vector<256x32xf32>
    %70 = arith.addf %69, %68 : vector<256x32xf32>
    %c0_35 = arith.constant 0 : index
    %c0_36 = arith.constant 0 : index
    %71 = vector.load %arg6[%c0_35, %c0_36] : memref<1x32xf32, #tpu.memory_space<vmem>>, vector<1x32xf32>
    %72 = vector.broadcast %71 : vector<1x32xf32> to vector<256x32xf32>
    %73 = arith.addf %70, %72 : vector<256x32xf32>
    %cst_37 = arith.constant 0.000000e+00 : f32
    %74 = vector.broadcast %cst_37 : f32 to vector<256x32xf32>
    %75 = arith.maximumf %73, %74 : vector<256x32xf32>
    %76 = vector.shape_cast %75 : vector<256x32xf32> to vector<1x16x16x32xf32>
    %c0_38 = arith.constant 0 : index
    %c0_39 = arith.constant 0 : index
    %c0_40 = arith.constant 0 : index
    %c0_41 = arith.constant 0 : index
    %77 = vector.load %arg7[%c0_38, %c0_39, %c0_40, %c0_41] : memref<1x16x16x32xf32, #tpu.memory_space<vmem>>, vector<1x16x16x32xf32>
    tpu.vector_store %arg7[%c0_38, %c0_39, %c0_40, %c0_41], %76 {strides = array<i32>} : memref<1x16x16x32xf32, #tpu.memory_space<vmem>>, vector<1x16x16x32xf32>,
    return
  }
  func.func @transform_0(%arg0: i32, %arg1: i32) -> (i32, i32, i32, i32) {
    %c0_i32 = arith.constant 0 : i32
    %c0_i32_0 = arith.constant 0 : i32
    %c0_i32_1 = arith.constant 0 : i32
    %c0_i32_2 = arith.constant 0 : i32
    return %arg0, %c0_i32, %c0_i32_0, %c0_i32_1 : i32, i32, i32, i32
  }
  func.func @transform_1(%arg0: i32, %arg1: i32) -> (i32, i32) {
    %c0_i32 = arith.constant 0 : i32
    %c0_i32_0 = arith.constant 0 : i32
    %c0_i32_1 = arith.constant 0 : i32
    return %c0_i32, %c0_i32_0 : i32, i32
  }
  func.func @transform_2(%arg0: i32, %arg1: i32) -> (i32, i32) {
    %c0_i32 = arith.constant 0 : i32
    %c0_i32_0 = arith.constant 0 : i32
    %c0_i32_1 = arith.constant 0 : i32
    return %c0_i32, %c0_i32_0 : i32, i32
  }
  func.func @transform_3(%arg0: i32, %arg1: i32) -> (i32, i32, i32) {
    %c0_i32 = arith.constant 0 : i32
    %c0_i32_0 = arith.constant 0 : i32
    %c0_i32_1 = arith.constant 0 : i32
    %c0_i32_2 = arith.constant 0 : i32
    return %c0_i32, %c0_i32_0, %c0_i32_1 : i32, i32, i32
  }
  func.func @transform_4(%arg0: i32, %arg1: i32) -> (i32, i32) {
    %c0_i32 = arith.constant 0 : i32
    %c0_i32_0 = arith.constant 0 : i32
    %c0_i32_1 = arith.constant 0 : i32
    return %c0_i32, %c0_i32_0 : i32, i32
  }
  func.func @transform_5(%arg0: i32, %arg1: i32) -> (i32, i32, i32, i32) {
    %c0_i32 = arith.constant 0 : i32
    %c0_i32_0 = arith.constant 0 : i32
    %c0_i32_1 = arith.constant 0 : i32
    return %arg0, %arg1, %c0_i32, %c0_i32_0 : i32, i32, i32, i32
  }
}

</mosaic_0001>

<bundles_post_ra>
// kernel: tpu_custom_call.1
= control target key start
LH: loop header
LB: loop body
LE: loop exit
PB: predicated region body
PF: predicated region fallthrough
CT: control target
= control target key end

     0   :  { %10 = vsyncpa [#allocation4], 0  ;;  %s5411_s0 = inlined_call_operand.vmem [shape: bf16[2,18,16,4], index: 0, kind: input, shape index: {}]   ;;  %s5412_s1 = inlined_call_operand.vmem [shape: bf16[4,256], index: 1, kind: input, shape index: {}]   ;;  %s5413_s2 = inlined_call_operand.vmem [shape: f32[1,256], index: 2, kind: input, shape index: {}]   ;;  %s5414_s3 = inlined_call_operand.vmem [shape: bf16[3,256,96], index: 3, kind: input, shape index: {}]   ;;  %s5415_s4 = inlined_call_operand.vmem [shape: f32[1,32], index: 4, kind: input, shape index: {}]   ;;  %s5416_s5 = inlined_call_operand.hbm [shape: f32[2,16,16,32], index: 5, kind: output, shape index: {}]  }
   0x1   :  { %12 = vsyncpa [#allocation4 + $0x1], 0  ;;  %s4107_s18 = smov 0   ;;  %s4109_s19 = smov 0  }
   0x2   :  { %s4111_s20 = smov 0   ;;  %s4113_s21 = smov 0  }
   0x3   :  { %s4115_s22 = smov 0   ;;  %s4117_s23 = smov 0  }
   0x4 LB: > { %s3362_s24 = sadd.s32 4294967295, %s4068_s23   ;;  %s3363_s25 = sadd.s32 4294967294, %s4068_s23   ;;  %s4068_s23 = sphi %s4117_s23, %s18_s23   ;;  %s4064_s22 = sphi %s4115_s22, %s5461_s22   ;;  %s4060_s21 = sphi %s4113_s21, %s5460_s21   ;;  %s4056_s20 = sphi %s4111_s20, %s5459_s20   ;;  %s4052_s19 = sphi %s4109_s19, %s5458_s19   ;;  %s4048_s18 = sphi %s4107_s18, %s5457_s18  }
   0x5   : > { %s30_s26 = sadd.s32 1, %s4064_s22  ;;  %s149_s27 = sadd.s32 1, %s4056_s20 }
   0x6   : > { %p32_p0 = scmp.ge.s32.totalorder %s30_s26, 2  ;;  %p159_p1 = scmp.ne.s32.totalorder %s4056_s20, %s4052_s19 }
   0x7   : > { %p160_p2 = scmp.eq.s32.totalorder %s3362_s24, 1  ;;  %p165_p3 = scmp.ne.s32.totalorder %s4052_s19, %s4048_s18 }
   0x8   : > { %s5463_s26 = smov (%p32_p0, %s30_s26), 0  ;;  %p166_p5 = scmp.eq.s32.totalorder %s3363_s25, 1 }
   0x9   : > { %p4147_p4 = por %p160_p2, %p159_p1  ;;  %s144_s29 = ssub.s32 %s4064_s22, %s5463_s26 }
   0xa   : > { %p3366_p6 = scmp.ge.s32.totalorder %s4068_s23, 1  ;;  %p147_p7 = scmp.eq.s32.totalorder %s144_s29, 0 }
   0xb   : > { %p4154_p8 = por %p166_p5, %p165_p3  ;;  %p204_p9 = scmp.lt.s32.totalorder %s4068_s23, 3 }
   0xc   : > { %s4160_s6 = scalar_select %p147_p7, %s4056_s20, %s149_s27  }
   0xd   : > { %p205_p10 = pnand %p3366_p6, %p204_p9 }
   0xf   : > { %208 = sbr.rel (%p205_p10) target bundleno = 1101 (0x44d), region = 40 }
  0x16   : > { %v3387_v0 = vld.sshfl [vmem:[%s5412_s1] sm:$0x33 pattern:$0x76325410]  ;;  %vm446_vm0 = vcmask 1041408   ;;  %v4070_v3 = vmov 0   ;;  %v282_v55 = vlaneseq }
  0x17   : > { %v390_v1 = vcombine.high %v3387_v0, %v3387_v0  ;;  %v448_v2 = vsel %vm446_vm0, %v3387_v0, 0  ;;  %485 = vmatprep.mubr.bf16.mxu0 %v4070_v3  ;;  %p232_p11 = scmp.lt.s32.totalorder %s4060_s21, 1  ;;  %vm391_vm1 = vcmask 31744   ;;  %v3941_v7 = vld [vmem:[%s5414_s3 + $0x40] sm:$0xff]   ;;  %v3943_v9 = vld [vmem:[%s5414_s3 + $0x48] sm:$0xff]   ;;  %v3947_v13 = vld [vmem:[%s5414_s3 + $0x50] sm:$0xff]  }
  0x18   : > { %v3942_v8 = vld [vmem:[%s5414_s3] sm:$0xff]   ;;  %v3944_v12 = vld [vmem:[%s5414_s3 + $0x8] sm:$0xff]   ;;  %v3948_v17 = vld [vmem:[%s5414_s3 + $0x10] sm:$0xff]   ;;  %v4327_v56 = vshrl.u32 %v282_v55, 7  ;;  %s4071_s12 = smov 32   ;;  %s4072_s14 = smov 64  }
  0x19   : > { %3388 = vmatprep.subr.msk.bf16.mxu0 %vm446_vm0, %v390_v1  ;;  %s233_s9 = scalar_select %p232_p11, %s4060_s21, 1  ;;  %v3945_v10 = vld [vmem:[%s5414_s3 + $0xc0] sm:$0xff]   ;;  %v3949_v15 = vld [vmem:[%s5414_s3 + $0xc8] sm:$0xff]   ;;  %v3951_v18 = vld [vmem:[%s5414_s3 + $0x58] sm:$0xff]  }
  0x1a   : > { %454 = vmatpush1.bf16.msra.mxu0 %v448_v2  ;;  %v3946_v11 = vld [vmem:[%s5414_s3 + $0x80] sm:$0xff]   ;;  %3526 = vmatprep.subr.bf16.mxu1 %v3945_v10  ;;  %v3950_v16 = vld [vmem:[%s5414_s3 + $0x88] sm:$0xff]   ;;  %v3953_v19 = vld [vmem:[%s5414_s3 + $0xd0] sm:$0xff]   ;;  %v284_v59 = vsub.s32 0, %v4327_v56  ;;  %v288_v62 = vsub.s32 1, %v4327_v56  ;;  %vm2266_vm2 = vcmp.lt.s32.totalorder %v4327_v56, 1 }
  0x1b   : > { %s3862_s10 = smul.u32 144, %s233_s9  ;;  %3638 = vmatprep.subr.bf16.mxu0 %v3941_v7  ;;  %3527 = vmatpush3.bf16.msra.mxu1 %v3946_v11  ;;  %v3954_v20 = vld [vmem:[%s5414_s3 + $0x90] sm:$0xff]   ;;  %v3952_v21 = vld [vmem:[%s5414_s3 + $0x18] sm:$0xff]   ;;  %v3955_v22 = vld [vmem:[%s5414_s3 + $0x60] sm:$0xff]   ;;  %s4073_s15 = smov 96  }
  0x1c   : > { %3528 = vmatprep.subr.bf16.mxu1 %v3949_v15  ;;  %v3957_v24 = vld [vmem:[%s5414_s3 + $0xd8] sm:$0xff]   ;;  %v3956_v26 = vld [vmem:[%s5414_s3 + $0x20] sm:$0xff]   ;;  %v3959_v27 = vld [vmem:[%s5414_s3 + $0x68] sm:$0xff]   ;;  %s229_s16 = sand.u32 1, %s4052_s19   ;;  %s3525_s25 = sshll.u32 %s4060_s21, 12 }
  0x1d   : > { %s4171_s13 = scalar_lea.vmem %s5411_s0, %s3862_s10  ;;  %v3958_v25 = vld [vmem:[%s5414_s3 + $0x98] sm:$0xff]   ;;  %v3960_v34 = vld [vmem:[%s5414_s3 + $0x28] sm:$0xff]   ;;  %v3961_v36 = vld [vmem:[%s5414_s3 + $0xe0] sm:$0xff]   ;;  %s3367_s17 = sshll.u32 %s229_s16, 8 }
  0x1e   : > { %v3924_v4 = vld [vmem:[%s4171_s13] sm:$0xff]   ;;  %v3925_v5 = vld [vmem:[%s4171_s13 + $0x8] sm:$0xff]   ;;  %v3926_v6 = vld [vmem:[%s4171_s13 + $0x10] sm:$0xff]   ;;  %s5288_s24 = scalar_lea.vmem [#allocation3], %s3367_s17  ;;  %s5355_s8 = scalar_lea.hbm %s5416_s5, %s3525_s25 }
  0x1f   : > { %3389 = vmatmul.mubr.msk.bf16.vlgmr.msra.gmra.mrb[0].mxu0 %vm391_vm1, %v3924_v4  ;;  %v3927_v14 = vld [vmem:[%s4171_s13 + $0x18] sm:$0xff]   ;;  %3529 = vmatpush3.bf16.msra.mxu1 %v3950_v16  ;;  %v3928_v23 = vld [vmem:[%s4171_s13 + $0x20] sm:$0xff]   ;;  %v3929_v28 = vld [vmem:[%s4171_s13 + $0x28] sm:$0xff]   ;;  %s3287_s27 = sshll.u32 %s5288_s24, 4  ;;  %s5365_s21 = scalar_lea.sflag [#allocation4], %s229_s16  ;;  %s5357_s27 = int_to_ptr.vmem [resolvable:$true] %s3287_s27 }
  0x20   : > { %495 = vmatprep.mubr.bf16.mxu0 %v4070_v3  ;;  %3639 = vmatpush3.bf16.msra.mxu0 %v3942_v8  ;;  %v3930_v29 = vld [vmem:[%s4171_s13 + $0x30] sm:$0xff]   ;;  %v3931_v30 = vld [vmem:[%s4171_s13 + $0x38] sm:$0xff]   ;;  %v3932_v31 = vld [vmem:[%s4171_s13 + $0x40] sm:$0xff]   ;;  %s3990_s9 = scalar_lea.vmem %s5357_s27, 4096  ;;  %s4074_s10 = smov [#allocation3]  }
  0x21   : > { %3640 = vmatprep.subr.bf16.mxu0 %v3943_v9  ;;  %3530 = vmatprep.subr.bf16.mxu1 %v3953_v19  ;;  %v3933_v32 = vld [vmem:[%s4171_s13 + $0x48] sm:$0xff]   ;;  %v3934_v33 = vld [vmem:[%s4171_s13 + $0x50] sm:$0xff]   ;;  %v3935_v35 = vld [vmem:[%s4171_s13 + $0x58] sm:$0xff]   ;;  %p3991_p12 = scmp.ne.s32.totalorder %s5357_s27, %s3990_s9 }
  0x22   : > { %v3964_v37 = vld [vmem:[%s5414_s3 + $0x70] sm:$0xff]   ;;  %v3963_v38 = vld [vmem:[%s5414_s3 + $0xa0] sm:$0xff]   ;;  %v3966_v40 = vld [vmem:[%s5414_s3 + $0xe8] sm:$0xff]  }
  0x23   : > { %3531 = vmatpush3.bf16.msra.mxu1 %v3954_v20  ;;  %v3965_v39 = vld [vmem:[%s5414_s3 + $0x30] sm:$0xff]   ;;  %v3968_v41 = vld [vmem:[%s5414_s3 + $0x78] sm:$0xff]   ;;  %v3967_v42 = vld [vmem:[%s5414_s3 + $0xa8] sm:$0xff]   ;;  %p3992_p13 = pnand %p3991_p12, %p4147_p4 }
  0x24   : > { %3641 = vmatpush3.bf16.msra.mxu0 %v3944_v12  ;;  %3532 = vmatprep.subr.bf16.mxu1 %v3957_v24  ;;  %v3969_v43 = vld [vmem:[%s5414_s3 + $0x38] sm:$0xff]   ;;  %v3936_v44 = vld [vmem:[%s4171_s13 + $0x60] sm:$0xff]   ;;  %v3970_v45 = vld [vmem:[%s5414_s3 + $0xf0] sm:$0xff]  }
  0x25   : > { %3642 = vmatprep.subr.bf16.mxu0 %v3947_v13  ;;  %v3971_v46 = vld [vmem:[%s5414_s3 + $0xb0] sm:$0xff]   ;;  %v3972_v47 = vld [vmem:[%s5414_s3 + $0xf8] sm:$0xff]   ;;  %v3937_v49 = vld [vmem:[%s4171_s13 + $0x68] sm:$0xff]   ;;  %p3993_p0 = pneg %p3992_p13 }
  0x26   : > { %v3973_v48 = vld [vmem:[%s5414_s3 + $0xb8] sm:$0xff]   ;;  %v3974_v50 = vld [vmem:[%s5414_s3 + $0x140] sm:$0xff]   ;;  %v3938_v51 = vld [vmem:[%s4171_s13 + $0x70] sm:$0xff]  }
  0x27   : > { %3390 = vmatmul.mubr.msk.bf16.gmra.mrb[4].mxu0 %vm391_vm1, %v3925_v5  ;;  %3533 = vmatpush3.bf16.msra.mxu1 %v3958_v25  ;;  %v3939_v52 = vld [vmem:[%s4171_s13 + $0x78] sm:$0xff]   ;;  %v3940_v53 = vld [vmem:[%s4171_s13 + $0x80] sm:$0xff]   ;;  %v3962_v54 = vld [vmem:[%s4171_s13 + $0x88] sm:$0xff]   ;;  %s3994_s13 = sshll.u32 %s4074_s10, 4  ;;  %s3995_s13 = int_to_ptr.vmem [resolvable:$false] %s3994_s13 }
  0x28   : > { %505 = vmatprep.mubr.bf16.mxu0 %v4070_v3  ;;  %3643 = vmatpush3.bf16.msra.mxu0 %v3948_v17  ;;  %v280_v61 = vld [vmem:[%s5413_s2] sm:$0x3]  ;;  %s3996_s11 = scalar_lea.vmem %s3995_s13, 8192  ;;  %p3997_p1 = scmp.lt.s32.totalorder %s5357_s27, %s3995_s13 }
  0x29   : > { %3644 = vmatprep.subr.bf16.mxu0 %v3951_v18  ;;  %3534 = vmatprep.subr.bf16.mxu1 %v3961_v36  ;;  %v4334_v0 = vrot.slane %v280_v61, %v284_v59  ;;  %v4336_v1 = vrot.slane %v280_v61, %v288_v62  ;;  %v3975_v18 = vld [vmem:[%s5414_s3 + $0x100] sm:$0xff]   ;;  %v3979_v36 = vld [vmem:[%s5414_s3 + $0x110] sm:$0xff]   ;;  %p3998_p2 = scmp.lt.s32.totalorder %s3996_s11, %s3990_s9 }
  0x2b   : > { %3535 = vmatpush3.bf16.msra.mxu1 %v3963_v38  ;;  %p3999_p3 = por %p3998_p2, %p3997_p1 }
  0x2c   : > { %3645 = vmatpush3.bf16.msra.mxu0 %v3952_v21  ;;  %3536 = vmatprep.subr.bf16.mxu1 %v3966_v40  ;;  %v3976_v21 = vld [vmem:[%s5414_s3 + $0x148] sm:$0xff]  }
  0x2d   : > { %3646 = vmatprep.subr.bf16.mxu0 %v3955_v22  ;;  %p4000_p5 = pnand %p3999_p3, %p3993_p0 }
  0x2f   : > { %3391 = vmatmul.mubr.msk.bf16.gmra.mrb[8].mxu0 %vm391_vm1, %v3926_v6  ;;  %3537 = vmatpush3.bf16.msra.mxu1 %v3967_v42 }
  0x30   : > { %515 = vmatprep.mubr.bf16.mxu0 %v4070_v3  ;;  %3647 = vmatpush3.bf16.msra.mxu0 %v3956_v26 }
  0x31   : > { %3648 = vmatprep.subr.bf16.mxu0 %v3959_v27  ;;  %3538 = vmatprep.subr.bf16.mxu1 %v3970_v45  ;;  %v3977_v27 = vld [vmem:[%s5414_s3 + $0x108] sm:$0xff]   ;;  %v3981_v45 = vld [vmem:[%s5414_s3 + $0x118] sm:$0xff]  }
  0x33   : > { %3539 = vmatpush3.bf16.msra.mxu1 %v3971_v46 }
  0x34   : > { %3649 = vmatpush3.bf16.msra.mxu0 %v3960_v34  ;;  %3540 = vmatprep.subr.bf16.mxu1 %v3972_v47 }
  0x35   : > { %3650 = vmatprep.subr.bf16.mxu0 %v3964_v37 }
  0x37   : > { %3392 = vmatmul.mubr.msk.bf16.gmra.mrb[12].mxu0 %vm391_vm1, %v3927_v14  ;;  %3541 = vmatpush3.bf16.msra.mxu1 %v3973_v48  ;;  %v3982_v48 = vld [vmem:[%s5414_s3 + $0x160] sm:$0xff]  }
  0x38   : > { %525 = vmatprep.mubr.bf16.mxu0 %v4070_v3  ;;  %3651 = vmatpush3.bf16.msra.mxu0 %v3965_v39  ;;  %v3980_v39 = vld [vmem:[%s5414_s3 + $0x158] sm:$0xff]  }
  0x39   : > { %3652 = vmatprep.subr.bf16.mxu0 %v3968_v41  ;;  %3750 = vmatprep.subr.bf16.mxu1 %v3974_v50 }
  0x3c   : > { %3653 = vmatpush3.bf16.msra.mxu0 %v3969_v43 }
  0x3f   : > { %3393 = vmatmul.mubr.msk.bf16.gmra.mrb[16].mxu0 %vm391_vm1, %v3928_v23 }
  0x40   : > { %535 = vmatprep.mubr.bf16.mxu0 %v4070_v3 }
  0x47   : > { %3394 = vmatmul.mubr.msk.bf16.gmra.mrb[20].mxu0 %vm391_vm1, %v3929_v28 }
  0x48   : > { %545 = vmatprep.mubr.bf16.mxu0 %v4070_v3 }
  0x4f   : > { %3395 = vmatmul.mubr.msk.bf16.gmra.mrb[24].mxu0 %vm391_vm1, %v3930_v29 }
  0x50   : > { %555 = vmatprep.mubr.bf16.mxu0 %v4070_v3 }
  0x57   : > { %3396 = vmatmul.mubr.msk.bf16.gmra.mrb[28].mxu0 %vm391_vm1, %v3931_v30  ;;  %v3978_v30 = vld [vmem:[%s5414_s3 + $0x150] sm:$0xff]  }
  0x58   : > { %565 = vmatprep.mubr.bf16.mxu0 %v4070_v3 }
  0x5f   : > { %3397 = vmatmul.mubr.msk.bf16.gmra.mrb[32].mxu0 %vm391_vm1, %v3932_v31 }
  0x60   : > { %575 = vmatprep.mubr.bf16.mxu0 %v4070_v3 }
  0x67   : > { %3398 = vmatmul.mubr.msk.bf16.gmra.mrb[36].mxu0 %vm391_vm1, %v3933_v32 }
  0x68   : > { %585 = vmatprep.mubr.bf16.mxu0 %v4070_v3 }
  0x6f   : > { %3399 = vmatmul.mubr.msk.bf16.gmra.mrb[40].mxu0 %vm391_vm1, %v3934_v33 }
  0x70   : > { %595 = vmatprep.mubr.bf16.mxu0 %v4070_v3 }
  0x77   : > { %3400 = vmatmul.mubr.msk.bf16.gmra.mrb[44].mxu0 %vm391_vm1, %v3935_v35 }
  0x78   : > { %605 = vmatprep.mubr.bf16.mxu0 %v4070_v3 }
  0x7f   : > { %3401 = vmatmul.mubr.msk.bf16.gmra.mrb[48].mxu0 %vm391_vm1, %v3936_v44 }
  0x80   : > { %615 = vmatprep.mubr.bf16.mxu0 %v4070_v3 }
  0x87   : > { %3402 = vmatmul.mubr.msk.bf16.gmra.mrb[52].mxu0 %vm391_vm1, %v3937_v49 }
  0x88   : > { %625 = vmatprep.mubr.bf16.mxu0 %v4070_v3 }
  0x8f   : > { %3403 = vmatmul.mubr.msk.bf16.gmra.mrb[56].mxu0 %vm391_vm1, %v3938_v51 }
  0x90   : > { %635 = vmatprep.mubr.bf16.mxu0 %v4070_v3 }
  0x97   : > { %3404 = vmatmul.mubr.msk.bf16.gmra.mrb[60].mxu0 %vm391_vm1, %v3939_v52 }
  0x98   : > { %645 = vmatprep.mubr.bf16.mxu0 %v4070_v3 }
  0x9f   : > { %3405 = vmatmul.mubr.msk.bf16.gmra.mrb[64].mxu0 %vm391_vm1, %v3940_v53 }
  0xa0   : > { %655 = vmatprep.mubr.bf16.mxu0 %v4070_v3 }
  0xa7   : > { %3406 = vmatmul.mubr.msk.bf16.gmra.mrb[68].mxu0 %vm391_vm1, %v3962_v54  ;;  %v3983_v54 = vld [vmem:[%s5414_s3 + $0x120] sm:$0xff]   ;;  %vm2587_vm1 = vcmp.lt.s32.totalorder %v4327_v56, 7 }
  0xa8   : > { %1302 = vmatprep.mubr.bf16.mxu0 %v4070_v3 }
  0xaf   : > { %1303 = vmatmul.mubr.bf16.vlgmr.msra.gmra.mrb[72].mxu0 %v4070_v3 }
  0xf2   : > { %v487_v57 = vpop.f32.mrb[0].mxu0 }
  0xf3   : > { %v489_v58 = vpop.f32.mrb[1].mxu0 }
  0xf4   : > { %v491_v60 = vpop.f32.mrb[2].mxu0  ;;  %v3984_v58 = vld [vmem:[%s5414_s3 + $0x168] sm:$0xff]  }
  0xf5   : > { %v493_v63 = vpop.f32.mrb[3].mxu0 }
  0xfa   : > { %v497_v2 = vpop.f32.mrb[4].mxu0 }
  0xfb   : > { %v498_v4 = vadd.f32 %v497_v2, %v4334_v0  ;;  %v499_v5 = vpop.f32.mrb[5].mxu0  ;;  %v3985_v2 = vld [vmem:[%s5414_s3 + $0x128] sm:$0xff]  }
  0xfc   : > { %v500_v6 = vadd.f32 %v499_v5, %v4336_v1  ;;  %v501_v7 = vpop.f32.mrb[6].mxu0 }
  0xfd   : > { %v502_v8 = vadd.f32 %v501_v7, %v4334_v0  ;;  %v503_v9 = vpop.f32.mrb[7].mxu0  ;;  %v670_v11 = vmax.f32 %v498_v4, 0.0 }
  0xfe   : > { %v504_v10 = vadd.f32 %v503_v9, %v4336_v1  ;;  %v671_v13 = vmax.f32 %v500_v6, 0.0  ;;  %v3986_v6 = vld [vmem:[%s5414_s3 + $0x170] sm:$0xff]  }
  0xff   : > { %v672_v12 = vmax.f32 %v502_v8, 0.0 }
 0x100   : > { %v673_v14 = vmax.f32 %v504_v10, 0.0 }
 0x101   : > { %v740_v15 = vpack.c.bf16 %v672_v12, %v670_v11  ;;  %v3987_v12 = vld [vmem:[%s5414_s3 + $0x130] sm:$0xff]  }
 0x102   : > { %v507_v16 = vpop.f32.mrb[8].mxu0  ;;  %v741_v17 = vpack.c.bf16 %v673_v14, %v671_v13 }
 0x103   : > { %v508_v19 = vadd.f32 %v507_v16, %v4334_v0  ;;  %v509_v20 = vpop.f32.mrb[9].mxu0 }
 0x104   : > { %v510_v22 = vadd.f32 %v509_v20, %v4336_v1  ;;  %v511_v23 = vpop.f32.mrb[10].mxu0  ;;  %1045 = vmatprep.mubr.bf16.mxu1 %v741_v17  ;;  %1310 = vmatprep.mubr.bf16.mxu0 %v741_v17 }
 0x105   : > { %v512_v24 = vadd.f32 %v511_v23, %v4334_v0  ;;  %v513_v25 = vpop.f32.mrb[11].mxu0  ;;  %1046 = vmatmul.mubr.bf16.vlgmr.msra.gmra.mrb[0].mxu1 %v740_v15  ;;  %1311 = vmatmul.mubr.bf16.gmra.mrb[76].mxu0 %v740_v15  ;;  %v674_v28 = vmax.f32 %v508_v19, 0.0  ;;  %v3988_v15 = vld [vmem:[%s5414_s3 + $0x178] sm:$0xff]  }
 0x106   : > { %v514_v26 = vadd.f32 %v513_v25, %v4336_v1  ;;  %3751 = vmatpush3.bf16.msra.mxu1 %v3975_v18  ;;  %v675_v31 = vmax.f32 %v510_v22, 0.0 }
 0x107   : > { %v676_v29 = vmax.f32 %v512_v24, 0.0  ;;  %3752 = vmatprep.subr.bf16.mxu1 %v3976_v21  ;;  %v3989_v21 = vld [vmem:[%s5414_s3 + $0x138] sm:$0xff]  }
 0x108   : > { %v677_v32 = vmax.f32 %v514_v26, 0.0 }
 0x109   : > { %v4358_v33 = vpack.c.bf16 %v676_v29, %v674_v28 }
 0x10a   : > { %v4360_v34 = vpack.c.bf16 %v677_v32, %v675_v31  ;;  %v517_v35 = vpop.f32.mrb[12].mxu0  ;;  %3753 = vmatpush3.bf16.msra.mxu1 %v3977_v27 }
 0x10b   : > { %v518_v37 = vadd.f32 %v517_v35, %v4334_v0  ;;  %v519_v38 = vpop.f32.mrb[13].mxu0  ;;  %3754 = vmatprep.subr.bf16.mxu1 %v3978_v30 }
 0x10c   : > { %v520_v40 = vadd.f32 %v519_v38, %v4336_v1  ;;  %v521_v41 = vpop.f32.mrb[14].mxu0  ;;  %1053 = vmatprep.mubr.bf16.mxu1 %v4360_v34  ;;  %1318 = vmatprep.mubr.bf16.mxu0 %v4360_v34 }
 0x10d   : > { %v522_v42 = vadd.f32 %v521_v41, %v4334_v0  ;;  %v523_v43 = vpop.f32.mrb[15].mxu0  ;;  %1054 = vmatmul.mubr.bf16.gmra.mrb[4].mxu1 %v4358_v33  ;;  %1319 = vmatmul.mubr.bf16.gmra.mrb[80].mxu0 %v4358_v33  ;;  %v678_v46 = vmax.f32 %v518_v37, 0.0 }
 0x10e   : > { %v524_v44 = vadd.f32 %v523_v43, %v4336_v1  ;;  %3755 = vmatpush3.bf16.msra.mxu1 %v3979_v36  ;;  %v679_v49 = vmax.f32 %v520_v40, 0.0 }
 0x10f   : > { %v680_v47 = vmax.f32 %v522_v42, 0.0  ;;  %3756 = vmatprep.subr.bf16.mxu1 %v3980_v39 }
 0x110   : > { %v681_v50 = vmax.f32 %v524_v44, 0.0 }
 0x111   : > { %v4382_v51 = vpack.c.bf16 %v680_v47, %v678_v46 }
 0x112   : > { %v4384_v52 = vpack.c.bf16 %v681_v50, %v679_v49  ;;  %v527_v53 = vpop.f32.mrb[16].mxu0  ;;  %3757 = vmatpush3.bf16.msra.mxu1 %v3981_v45 }
 0x113   : > { %v528_v55 = vadd.f32 %v527_v53, %v4334_v0  ;;  %v529_v57 = vpop.f32.mrb[17].mxu0  ;;  %3758 = vmatprep.subr.bf16.mxu1 %v3982_v48 }
 0x114   : > { %v530_v59 = vadd.f32 %v529_v57, %v4336_v1  ;;  %v531_v60 = vpop.f32.mrb[18].mxu0  ;;  %1061 = vmatprep.mubr.bf16.mxu1 %v4384_v52  ;;  %1326 = vmatprep.mubr.bf16.mxu0 %v4384_v52 }
 0x115   : > { %v532_v61 = vadd.f32 %v531_v60, %v4334_v0  ;;  %v533_v62 = vpop.f32.mrb[19].mxu0  ;;  %1062 = vmatmul.mubr.bf16.gmra.mrb[8].mxu1 %v4382_v51  ;;  %1327 = vmatmul.mubr.bf16.gmra.mrb[84].mxu0 %v4382_v51  ;;  %v682_v4 = vmax.f32 %v528_v55, 0.0 }
 0x116   : > { %v534_v63 = vadd.f32 %v533_v62, %v4336_v1  ;;  %3759 = vmatpush3.bf16.msra.mxu1 %v3983_v54  ;;  %v683_v7 = vmax.f32 %v530_v59, 0.0 }
 0x117   : > { %v684_v5 = vmax.f32 %v532_v61, 0.0  ;;  %3760 = vmatprep.subr.bf16.mxu1 %v3984_v58 }
 0x118   : > { %v685_v8 = vmax.f32 %v534_v63, 0.0 }
 0x119   : > { %v4406_v9 = vpack.c.bf16 %v684_v5, %v682_v4 }
 0x11a   : > { %v4408_v10 = vpack.c.bf16 %v685_v8, %v683_v7  ;;  %v537_v11 = vpop.f32.mrb[20].mxu0  ;;  %3761 = vmatpush3.bf16.msra.mxu1 %v3985_v2 }
 0x11b   : > { %v538_v13 = vadd.f32 %v537_v11, %v4334_v0  ;;  %v539_v14 = vpop.f32.mrb[21].mxu0  ;;  %3762 = vmatprep.subr.bf16.mxu1 %v3986_v6 }
 0x11c   : > { %v540_v16 = vadd.f32 %v539_v14, %v4336_v1  ;;  %v541_v17 = vpop.f32.mrb[22].mxu0  ;;  %1069 = vmatprep.mubr.bf16.mxu1 %v4408_v10  ;;  %1334 = vmatprep.mubr.bf16.mxu0 %v4408_v10 }
 0x11d   : > { %v542_v18 = vadd.f32 %v541_v17, %v4334_v0  ;;  %v543_v19 = vpop.f32.mrb[23].mxu0  ;;  %1070 = vmatmul.mubr.bf16.gmra.mrb[12].mxu1 %v4406_v9  ;;  %1335 = vmatmul.mubr.bf16.gmra.mrb[88].mxu0 %v4406_v9  ;;  %v686_v22 = vmax.f32 %v538_v13, 0.0 }
 0x11e   : > { %v544_v20 = vadd.f32 %v543_v19, %v4336_v1  ;;  %3763 = vmatpush3.bf16.msra.mxu1 %v3987_v12  ;;  %v687_v24 = vmax.f32 %v540_v16, 0.0 }
 0x11f   : > { %v688_v23 = vmax.f32 %v542_v18, 0.0  ;;  %3764 = vmatprep.subr.bf16.mxu1 %v3988_v15 }
 0x120   : > { %v689_v25 = vmax.f32 %v544_v20, 0.0 }
 0x121   : > { %v4427_v26 = vpack.c.bf16 %v688_v23, %v686_v22 }
 0x122   : > { %v4429_v27 = vpack.c.bf16 %v689_v25, %v687_v24  ;;  %v547_v28 = vpop.f32.mrb[24].mxu0  ;;  %3765 = vmatpush3.bf16.msra.mxu1 %v3989_v21 }
 0x123   : > { %v548_v29 = vadd.f32 %v547_v28, %v4334_v0  ;;  %v549_v30 = vpop.f32.mrb[25].mxu0 }
 0x124   : > { %v550_v31 = vadd.f32 %v549_v30, %v4336_v1  ;;  %v551_v32 = vpop.f32.mrb[26].mxu0  ;;  %1077 = vmatprep.mubr.bf16.mxu1 %v4429_v27  ;;  %1342 = vmatprep.mubr.bf16.mxu0 %v4429_v27 }
 0x125   : > { %v552_v35 = vadd.f32 %v551_v32, %v4334_v0  ;;  %v553_v36 = vpop.f32.mrb[27].mxu0  ;;  %1078 = vmatmul.mubr.bf16.gmra.mrb[16].mxu1 %v4427_v26  ;;  %1343 = vmatmul.mubr.bf16.gmra.mrb[92].mxu0 %v4427_v26  ;;  %v690_v38 = vmax.f32 %v548_v29, 0.0 }
 0x126   : > { %v554_v37 = vadd.f32 %v553_v36, %v4336_v1  ;;  %v691_v40 = vmax.f32 %v550_v31, 0.0 }
 0x127   : > { %v692_v39 = vmax.f32 %v552_v35, 0.0 }
 0x128   : > { %v693_v41 = vmax.f32 %v554_v37, 0.0 }
 0x129   : > { %v4439_v42 = vpack.c.bf16 %v692_v39, %v690_v38 }
 0x12a   : > { %v4441_v43 = vpack.c.bf16 %v693_v41, %v691_v40  ;;  %v557_v44 = vpop.f32.mrb[28].mxu0 }
 0x12b   : > { %v558_v45 = vadd.f32 %v557_v44, %v4334_v0  ;;  %v559_v46 = vpop.f32.mrb[29].mxu0 }
 0x12c   : > { %v560_v47 = vadd.f32 %v559_v46, %v4336_v1  ;;  %v561_v48 = vpop.f32.mrb[30].mxu0  ;;  %1085 = vmatprep.mubr.bf16.mxu1 %v4441_v43  ;;  %1350 = vmatprep.mubr.bf16.mxu0 %v4441_v43 }
 0x12d   : > { %v562_v49 = vadd.f32 %v561_v48, %v4334_v0  ;;  %v563_v50 = vpop.f32.mrb[31].mxu0  ;;  %1086 = vmatmul.mubr.bf16.gmra.mrb[20].mxu1 %v4439_v42  ;;  %1351 = vmatmul.mubr.bf16.gmra.mrb[96].mxu0 %v4439_v42  ;;  %v694_v54 = vmax.f32 %v558_v45, 0.0 }
 0x12e   : > { %v564_v53 = vadd.f32 %v563_v50, %v4336_v1  ;;  %v695_v57 = vmax.f32 %v560_v47, 0.0 }
 0x12f   : > { %v696_v55 = vmax.f32 %v562_v49, 0.0 }
 0x130   : > { %v697_v58 = vmax.f32 %v564_v53, 0.0 }
 0x131   : > { %v4451_v59 = vpack.c.bf16 %v696_v55, %v694_v54 }
 0x132   : > { %v4453_v60 = vpack.c.bf16 %v697_v58, %v695_v57  ;;  %v567_v61 = vpop.f32.mrb[32].mxu0 }
 0x133   : > { %v568_v62 = vadd.f32 %v567_v61, %v4334_v0  ;;  %v569_v63 = vpop.f32.mrb[33].mxu0 }
 0x134   : > { %v570_v2 = vadd.f32 %v569_v63, %v4336_v1  ;;  %v571_v4 = vpop.f32.mrb[34].mxu0  ;;  %1093 = vmatprep.mubr.bf16.mxu1 %v4453_v60  ;;  %1358 = vmatprep.mubr.bf16.mxu0 %v4453_v60 }
 0x135   : > { %v572_v5 = vadd.f32 %v571_v4, %v4334_v0  ;;  %v573_v6 = vpop.f32.mrb[35].mxu0  ;;  %1094 = vmatmul.mubr.bf16.gmra.mrb[24].mxu1 %v4451_v59  ;;  %1359 = vmatmul.mubr.bf16.gmra.mrb[100].mxu0 %v4451_v59  ;;  %v698_v8 = vmax.f32 %v568_v62, 0.0 }
 0x136   : > { %v574_v7 = vadd.f32 %v573_v6, %v4336_v1  ;;  %v699_v12 = vmax.f32 %v570_v2, 0.0 }
 0x137   : > { %v700_v11 = vmax.f32 %v572_v5, 0.0 }
 0x138   : > { %v701_v13 = vmax.f32 %v574_v7, 0.0 }
 0x139   : > { %v4463_v14 = vpack.c.bf16 %v700_v11, %v698_v8 }
 0x13a   : > { %v4465_v15 = vpack.c.bf16 %v701_v13, %v699_v12  ;;  %v577_v16 = vpop.f32.mrb[36].mxu0 }
 0x13b   : > { %v578_v17 = vadd.f32 %v577_v16, %v4334_v0  ;;  %v579_v18 = vpop.f32.mrb[37].mxu0 }
 0x13c   : > { %v580_v19 = vadd.f32 %v579_v18, %v4336_v1  ;;  %v581_v20 = vpop.f32.mrb[38].mxu0  ;;  %1101 = vmatprep.mubr.bf16.mxu1 %v4465_v15  ;;  %1366 = vmatprep.mubr.bf16.mxu0 %v4465_v15 }
 0x13d   : > { %v582_v21 = vadd.f32 %v581_v20, %v4334_v0  ;;  %v583_v22 = vpop.f32.mrb[39].mxu0  ;;  %1102 = vmatmul.mubr.bf16.gmra.mrb[28].mxu1 %v4463_v14  ;;  %1367 = vmatmul.mubr.bf16.gmra.mrb[104].mxu0 %v4463_v14  ;;  %v702_v24 = vmax.f32 %v578_v17, 0.0 }
 0x13e   : > { %v584_v23 = vadd.f32 %v583_v22, %v4336_v1  ;;  %v703_v28 = vmax.f32 %v580_v19, 0.0 }
 0x13f   : > { %v704_v25 = vmax.f32 %v582_v21, 0.0 }
 0x140   : > { %v705_v29 = vmax.f32 %v584_v23, 0.0 }
 0x141   : > { %v4475_v30 = vpack.c.bf16 %v704_v25, %v702_v24 }
 0x142   : > { %v4477_v31 = vpack.c.bf16 %v705_v29, %v703_v28  ;;  %v587_v32 = vpop.f32.mrb[40].mxu0 }
 0x143   : > { %v588_v35 = vadd.f32 %v587_v32, %v4334_v0  ;;  %v589_v36 = vpop.f32.mrb[41].mxu0 }
 0x144   : > { %v590_v37 = vadd.f32 %v589_v36, %v4336_v1  ;;  %v591_v38 = vpop.f32.mrb[42].mxu0  ;;  %1109 = vmatprep.mubr.bf16.mxu1 %v4477_v31  ;;  %1374 = vmatprep.mubr.bf16.mxu0 %v4477_v31 }
 0x145   : > { %v592_v39 = vadd.f32 %v591_v38, %v4334_v0  ;;  %v593_v40 = vpop.f32.mrb[43].mxu0  ;;  %1110 = vmatmul.mubr.bf16.gmra.mrb[32].mxu1 %v4475_v30  ;;  %1375 = vmatmul.mubr.bf16.gmra.mrb[108].mxu0 %v4475_v30  ;;  %v706_v44 = vmax.f32 %v588_v35, 0.0 }
 0x146   : > { %v594_v41 = vadd.f32 %v593_v40, %v4336_v1  ;;  %v707_v46 = vmax.f32 %v590_v37, 0.0 }
 0x147   : > { %v708_v45 = vmax.f32 %v592_v39, 0.0 }
 0x148   : > { %v709_v47 = vmax.f32 %v594_v41, 0.0 }
 0x149   : > { %v4487_v48 = vpack.c.bf16 %v708_v45, %v706_v44 }
 0x14a   : > { %v4489_v49 = vpack.c.bf16 %v709_v47, %v707_v46  ;;  %v597_v50 = vpop.f32.mrb[44].mxu0 }
 0x14b   : > { %v598_v53 = vadd.f32 %v597_v50, %v4334_v0  ;;  %v599_v54 = vpop.f32.mrb[45].mxu0 }
 0x14c   : > { %v600_v55 = vadd.f32 %v599_v54, %v4336_v1  ;;  %v601_v57 = vpop.f32.mrb[46].mxu0  ;;  %1117 = vmatprep.mubr.bf16.mxu1 %v4489_v49  ;;  %1382 = vmatprep.mubr.bf16.mxu0 %v4489_v49 }
 0x14d   : > { %v602_v58 = vadd.f32 %v601_v57, %v4334_v0  ;;  %v603_v61 = vpop.f32.mrb[47].mxu0  ;;  %1118 = vmatmul.mubr.bf16.gmra.mrb[36].mxu1 %v4487_v48  ;;  %1383 = vmatmul.mubr.bf16.gmra.mrb[112].mxu0 %v4487_v48  ;;  %v710_v63 = vmax.f32 %v598_v53, 0.0 }
 0x14e   : > { %v604_v62 = vadd.f32 %v603_v61, %v4336_v1  ;;  %v711_v4 = vmax.f32 %v600_v55, 0.0 }
 0x14f   : > { %v712_v2 = vmax.f32 %v602_v58, 0.0 }
 0x150   : > { %v713_v5 = vmax.f32 %v604_v62, 0.0 }
 0x151   : > { %v4499_v6 = vpack.c.bf16 %v712_v2, %v710_v63 }
 0x152   : > { %v4501_v7 = vpack.c.bf16 %v713_v5, %v711_v4  ;;  %v607_v8 = vpop.f32.mrb[48].mxu0 }
 0x153   : > { %v608_v11 = vadd.f32 %v607_v8, %v4334_v0  ;;  %v609_v12 = vpop.f32.mrb[49].mxu0 }
 0x154   : > { %v610_v13 = vadd.f32 %v609_v12, %v4336_v1  ;;  %v611_v16 = vpop.f32.mrb[50].mxu0  ;;  %1125 = vmatprep.mubr.bf16.mxu1 %v4501_v7  ;;  %1390 = vmatprep.mubr.bf16.mxu0 %v4501_v7 }
 0x155   : > { %v612_v17 = vadd.f32 %v611_v16, %v4334_v0  ;;  %v613_v18 = vpop.f32.mrb[51].mxu0  ;;  %1126 = vmatmul.mubr.bf16.gmra.mrb[40].mxu1 %v4499_v6  ;;  %1391 = vmatmul.mubr.bf16.gmra.mrb[116].mxu0 %v4499_v6  ;;  %v714_v20 = vmax.f32 %v608_v11, 0.0 }
 0x156   : > { %v614_v19 = vadd.f32 %v613_v18, %v4336_v1  ;;  %v715_v22 = vmax.f32 %v610_v13, 0.0 }
 0x157   : > { %v716_v21 = vmax.f32 %v612_v17, 0.0 }
 0x158   : > { %v717_v23 = vmax.f32 %v614_v19, 0.0 }
 0x159   : > { %v4511_v24 = vpack.c.bf16 %v716_v21, %v714_v20 }
 0x15a   : > { %v4513_v25 = vpack.c.bf16 %v717_v23, %v715_v22  ;;  %v617_v28 = vpop.f32.mrb[52].mxu0 }
 0x15b   : > { %v618_v29 = vadd.f32 %v617_v28, %v4334_v0  ;;  %v619_v32 = vpop.f32.mrb[53].mxu0 }
 0x15c   : > { %v620_v35 = vadd.f32 %v619_v32, %v4336_v1  ;;  %v621_v36 = vpop.f32.mrb[54].mxu0  ;;  %1133 = vmatprep.mubr.bf16.mxu1 %v4513_v25  ;;  %1398 = vmatprep.mubr.bf16.mxu0 %v4513_v25 }
 0x15d   : > { %v622_v37 = vadd.f32 %v621_v36, %v4334_v0  ;;  %v623_v38 = vpop.f32.mrb[55].mxu0  ;;  %1134 = vmatmul.mubr.bf16.gmra.mrb[44].mxu1 %v4511_v24  ;;  %1399 = vmatmul.mubr.bf16.gmra.mrb[120].mxu0 %v4511_v24  ;;  %v718_v40 = vmax.f32 %v618_v29, 0.0 }
 0x15e   : > { %v624_v39 = vadd.f32 %v623_v38, %v4336_v1  ;;  %v719_v44 = vmax.f32 %v620_v35, 0.0 }
 0x15f   : > { %v720_v41 = vmax.f32 %v622_v37, 0.0 }
 0x160   : > { %v721_v45 = vmax.f32 %v624_v39, 0.0 }
 0x161   : > { %v4523_v46 = vpack.c.bf16 %v720_v41, %v718_v40 }
 0x162   : > { %v4525_v47 = vpack.c.bf16 %v721_v45, %v719_v44  ;;  %v627_v50 = vpop.f32.mrb[56].mxu0 }
 0x163   : > { %v628_v53 = vadd.f32 %v627_v50, %v4334_v0  ;;  %v629_v54 = vpop.f32.mrb[57].mxu0 }
 0x164   : > { %v630_v55 = vadd.f32 %v629_v54, %v4336_v1  ;;  %v631_v57 = vpop.f32.mrb[58].mxu0  ;;  %1141 = vmatprep.mubr.bf16.mxu1 %v4525_v47  ;;  %1406 = vmatprep.mubr.bf16.mxu0 %v4525_v47 }
 0x165   : > { %v632_v58 = vadd.f32 %v631_v57, %v4334_v0  ;;  %v633_v61 = vpop.f32.mrb[59].mxu0  ;;  %1142 = vmatmul.mubr.bf16.gmra.mrb[48].mxu1 %v4523_v46  ;;  %1407 = vmatmul.mubr.bf16.gmra.mrb[124].mxu0 %v4523_v46  ;;  %v722_v63 = vmax.f32 %v628_v53, 0.0 }
 0x166   : > { %v634_v62 = vadd.f32 %v633_v61, %v4336_v1  ;;  %v723_v4 = vmax.f32 %v630_v55, 0.0 }
 0x167   : > { %v724_v2 = vmax.f32 %v632_v58, 0.0 }
 0x168   : > { %v725_v5 = vmax.f32 %v634_v62, 0.0 }
 0x169   : > { %v4535_v8 = vpack.c.bf16 %v724_v2, %v722_v63 }
 0x16a   : > { %v4537_v11 = vpack.c.bf16 %v725_v5, %v723_v4  ;;  %v637_v12 = vpop.f32.mrb[60].mxu0 }
 0x16b   : > { %v638_v13 = vadd.f32 %v637_v12, %v4334_v0  ;;  %v639_v16 = vpop.f32.mrb[61].mxu0 }
 0x16c   : > { %v640_v17 = vadd.f32 %v639_v16, %v4336_v1  ;;  %v641_v18 = vpop.f32.mrb[62].mxu0  ;;  %1149 = vmatprep.mubr.bf16.mxu1 %v4537_v11  ;;  %1414 = vmatprep.mubr.bf16.mxu0 %v4537_v11 }
 0x16d   : > { %v642_v19 = vadd.f32 %v641_v18, %v4334_v0  ;;  %v643_v20 = vpop.f32.mrb[63].mxu0  ;;  %1150 = vmatmul.mubr.bf16.gmra.mrb[52].mxu1 %v4535_v8  ;;  %1415 = vmatmul.mubr.bf16.gmra.mrb[128].mxu0 %v4535_v8  ;;  %v726_v22 = vmax.f32 %v638_v13, 0.0 }
 0x16e   : > { %v644_v21 = vadd.f32 %v643_v20, %v4336_v1  ;;  %v727_v28 = vmax.f32 %v640_v17, 0.0 }
 0x16f   : > { %v728_v23 = vmax.f32 %v642_v19, 0.0 }
 0x170   : > { %v729_v29 = vmax.f32 %v644_v21, 0.0 }
 0x171   : > { %v4547_v32 = vpack.c.bf16 %v728_v23, %v726_v22 }
 0x172   : > { %v4549_v35 = vpack.c.bf16 %v729_v29, %v727_v28  ;;  %v647_v36 = vpop.f32.mrb[64].mxu0 }
 0x173   : > { %v648_v37 = vadd.f32 %v647_v36, %v4334_v0  ;;  %v649_v38 = vpop.f32.mrb[65].mxu0 }
 0x174   : > { %v650_v39 = vadd.f32 %v649_v38, %v4336_v1  ;;  %v651_v40 = vpop.f32.mrb[66].mxu0  ;;  %1157 = vmatprep.mubr.bf16.mxu1 %v4549_v35  ;;  %1422 = vmatprep.mubr.bf16.mxu0 %v4549_v35 }
 0x175   : > { %v652_v41 = vadd.f32 %v651_v40, %v4334_v0  ;;  %v653_v44 = vpop.f32.mrb[67].mxu0  ;;  %1158 = vmatmul.mubr.bf16.gmra.mrb[56].mxu1 %v4547_v32  ;;  %1423 = vmatmul.mubr.bf16.gmra.mrb[132].mxu0 %v4547_v32  ;;  %v730_v50 = vmax.f32 %v648_v37, 0.0 }
 0x176   : > { %v654_v45 = vadd.f32 %v653_v44, %v4336_v1  ;;  %v731_v54 = vmax.f32 %v650_v39, 0.0 }
 0x177   : > { %v732_v53 = vmax.f32 %v652_v41, 0.0 }
 0x178   : > { %v733_v55 = vmax.f32 %v654_v45, 0.0 }
 0x179   : > { %v4559_v57 = vpack.c.bf16 %v732_v53, %v730_v50 }
 0x17a   : > { %v4561_v58 = vpack.c.bf16 %v733_v55, %v731_v54  ;;  %v657_v61 = vpop.f32.mrb[68].mxu0 }
 0x17b   : > { %v659_v62 = vpop.f32.mrb[69].mxu0 }
 0x17c   : > { %1165 = vmatprep.mubr.bf16.mxu1 %v4561_v58  ;;  %v661_v0 = vpop.f32.mrb[70].mxu0 }
 0x17d   : > { %1166 = vmatmul.mubr.bf16.gmra.mrb[60].mxu1 %v4559_v57  ;;  %v663_v63 = vpop.f32.mrb[71].mxu0 }
 0x17e   : > { %1624 = vmatprep.mubr.bf16.mxu1 %v4360_v34 }
 0x182   : > { %v3654_v2 = vpop.f32.mrb[72].mxu0 }
 0x183   : > { %v3655_v1 = vpop.f32.mrb[73].mxu0 }
 0x184   : > { %v3656_v4 = vadd.f32 %v3655_v1, %v3654_v2  ;;  %v3657_v5 = vpop.f32.mrb[74].mxu0 }
 0x185   : > { %1625 = vmatmul.mubr.bf16.vlgmr.msra.gmra.mrb[64].mxu1 %v4358_v33  ;;  %v3658_v12 = vpop.f32.mrb[75].mxu0 }
 0x186   : > { %1632 = vmatprep.mubr.bf16.mxu1 %v4384_v52  ;;  %v3659_v13 = vadd.f32 %v3658_v12, %v3657_v5 }
 0x18d   : > { %1633 = vmatmul.mubr.bf16.gmra.mrb[68].mxu1 %v4382_v51 }
 0x18e   : > { %1640 = vmatprep.mubr.bf16.mxu1 %v4408_v10 }
 0x195   : > { %1641 = vmatmul.mubr.bf16.gmra.mrb[72].mxu1 %v4406_v9  ;;  %v3519_v9 = vld [vmem:[%s5415_s4] ss:$0 sm:$0xff] }
 0x196   : > { %1648 = vmatprep.mubr.bf16.mxu1 %v4429_v27  ;;  %3042 = vrot.lane.b32.xlu0 %v3519_v9, %s4071_s12 }
 0x19d   : > { %1649 = vmatmul.mubr.bf16.gmra.mrb[76].mxu1 %v4427_v26 }
 0x19e   : > { %1656 = vmatprep.mubr.bf16.mxu1 %v4441_v43 }
 0x1a5   : > { %1657 = vmatmul.mubr.bf16.gmra.mrb[80].mxu1 %v4439_v42 }
 0x1a6   : > { %1664 = vmatprep.mubr.bf16.mxu1 %v4453_v60 }
 0x1ad   : > { %1665 = vmatmul.mubr.bf16.gmra.mrb[84].mxu1 %v4451_v59 }
 0x1ae   : > { %1672 = vmatprep.mubr.bf16.mxu1 %v4465_v15 }
 0x1b5   : > { %1673 = vmatmul.mubr.bf16.gmra.mrb[88].mxu1 %v4463_v14 }
 0x1b6   : > { %1680 = vmatprep.mubr.bf16.mxu1 %v4477_v31 }
 0x1bd   : > { %1681 = vmatmul.mubr.bf16.gmra.mrb[92].mxu1 %v4475_v30 }
 0x1be   : > { %1688 = vmatprep.mubr.bf16.mxu1 %v4489_v49 }
 0x1c5   : > { %1689 = vmatmul.mubr.bf16.gmra.mrb[96].mxu1 %v4487_v48 }
 0x1c6   : > { %1696 = vmatprep.mubr.bf16.mxu1 %v4501_v7 }
 0x1cd   : > { %1697 = vmatmul.mubr.bf16.gmra.mrb[100].mxu1 %v4499_v6 }
 0x1ce   : > { %1704 = vmatprep.mubr.bf16.mxu1 %v4513_v25 }
 0x1d5   : > { %1705 = vmatmul.mubr.bf16.gmra.mrb[104].mxu1 %v4511_v24 }
 0x1d6   : > { %1712 = vmatprep.mubr.bf16.mxu1 %v4525_v47 }
 0x1d8   : > { %v3542_v33 = vpop.f32.mrb[0].mxu1  ;;  %v3660_v34 = vpop.f32.mrb[76].mxu0 }
 0x1d9   : > { %v3543_v51 = vpop.f32.mrb[1].mxu1  ;;  %v3661_v52 = vpop.f32.mrb[77].mxu0 }
 0x1da   : > { %v3544_v10 = vadd.f32 %v3543_v51, %v3542_v33  ;;  %v3662_v26 = vadd.f32 %v3661_v52, %v3660_v34  ;;  %v3545_v27 = vpop.f32.mrb[2].mxu1  ;;  %v3663_v42 = vpop.f32.mrb[78].mxu0 }
 0x1db   : > { %v3546_v43 = vpop.f32.mrb[3].mxu1  ;;  %v3664_v59 = vpop.f32.mrb[79].mxu0 }
 0x1dc   : > { %v4592_v60 = vadd.f32 %v3656_v4, %v3544_v10  ;;  %v3547_v14 = vadd.f32 %v3546_v43, %v3545_v27  ;;  %v3665_v15 = vadd.f32 %v3664_v59, %v3663_v42 }
 0x1dd   : > { %1713 = vmatmul.mubr.bf16.gmra.mrb[108].mxu1 %v4523_v46 }
 0x1de   : > { %v4595_v30 = vadd.f32 %v3659_v13, %v3547_v14  ;;  %1720 = vmatprep.mubr.bf16.mxu1 %v4537_v11 }
 0x1e0   : > { %v3548_v31 = vpop.f32.mrb[4].mxu1  ;;  %v3666_v48 = vpop.f32.mrb[80].mxu0 }
 0x1e1   : > { %v3549_v49 = vpop.f32.mrb[5].mxu1  ;;  %v3667_v6 = vpop.f32.mrb[81].mxu0 }
 0x1e2   : > { %v3550_v7 = vadd.f32 %v3549_v49, %v3548_v31  ;;  %v3668_v24 = vadd.f32 %v3667_v6, %v3666_v48  ;;  %v3551_v25 = vpop.f32.mrb[6].mxu1  ;;  %v3669_v47 = vpop.f32.mrb[82].mxu0 }
 0x1e3   : > { %v3552_v16 = vpop.f32.mrb[7].mxu1  ;;  %v3670_v17 = vpop.f32.mrb[83].mxu0 }
 0x1e4   : > { %v4598_v18 = vadd.f32 %v3662_v26, %v3550_v7  ;;  %v3553_v19 = vadd.f32 %v3552_v16, %v3551_v25  ;;  %v3671_v20 = vadd.f32 %v3670_v17, %v3669_v47 }
 0x1e5   : > { %1721 = vmatmul.mubr.bf16.gmra.mrb[112].mxu1 %v4535_v8 }
 0x1e6   : > { %v4601_v46 = vadd.f32 %v3665_v15, %v3553_v19  ;;  %1728 = vmatprep.mubr.bf16.mxu1 %v4549_v35 }
 0x1e8   : > { %v3554_v11 = vpop.f32.mrb[8].mxu1  ;;  %v3672_v21 = vpop.f32.mrb[84].mxu0 }
 0x1e9   : > { %v3555_v22 = vpop.f32.mrb[9].mxu1  ;;  %v3673_v23 = vpop.f32.mrb[85].mxu0 }
 0x1ea   : > { %v3556_v28 = vadd.f32 %v3555_v22, %v3554_v11  ;;  %v3674_v29 = vadd.f32 %v3673_v23, %v3672_v21  ;;  %v3557_v36 = vpop.f32.mrb[10].mxu1  ;;  %v3675_v37 = vpop.f32.mrb[86].mxu0 }
 0x1eb   : > { %v3558_v38 = vpop.f32.mrb[11].mxu1  ;;  %v3676_v39 = vpop.f32.mrb[87].mxu0 }
 0x1ec   : > { %v4604_v40 = vadd.f32 %v3668_v24, %v3556_v28  ;;  %v3559_v41 = vadd.f32 %v3558_v38, %v3557_v36  ;;  %v3677_v44 = vadd.f32 %v3676_v39, %v3675_v37 }
 0x1ed   : > { %1729 = vmatmul.mubr.bf16.gmra.mrb[116].mxu1 %v4547_v32 }
 0x1ee   : > { %v4607_v8 = vadd.f32 %v3671_v20, %v3559_v41  ;;  %1736 = vmatprep.mubr.bf16.mxu1 %v4561_v58 }
 0x1f0   : > { %v3560_v35 = vpop.f32.mrb[12].mxu1  ;;  %v3678_v45 = vpop.f32.mrb[88].mxu0 }
 0x1f1   : > { %v3561_v50 = vpop.f32.mrb[13].mxu1  ;;  %v3679_v53 = vpop.f32.mrb[89].mxu0 }
 0x1f2   : > { %v3562_v54 = vadd.f32 %v3561_v50, %v3560_v35  ;;  %v3680_v55 = vadd.f32 %v3679_v53, %v3678_v45  ;;  %v3563_v61 = vpop.f32.mrb[14].mxu1  ;;  %v3681_v62 = vpop.f32.mrb[90].mxu0 }
 0x1f3   : > { %v3564_v0 = vpop.f32.mrb[15].mxu1  ;;  %v3682_v63 = vpop.f32.mrb[91].mxu0 }
 0x1f4   : > { %v4610_v2 = vadd.f32 %v3674_v29, %v3562_v54  ;;  %v3565_v1 = vadd.f32 %v3564_v0, %v3563_v61  ;;  %v3683_v4 = vadd.f32 %v3682_v63, %v3681_v62 }
 0x1f5   : > { %1737 = vmatmul.mubr.bf16.gmra.mrb[120].mxu1 %v4559_v57 }
 0x1f6   : > { %v4613_v32 = vadd.f32 %v3677_v44, %v3565_v1  ;;  %1744 = vmatprep.mubr.bf16.mxu1 %v4070_v3 }
 0x1f8   : > { %v3566_v58 = vpop.f32.mrb[16].mxu1  ;;  %v3684_v5 = vpop.f32.mrb[92].mxu0 }
 0x1f9   : > { %v3567_v12 = vpop.f32.mrb[17].mxu1  ;;  %v3685_v13 = vpop.f32.mrb[93].mxu0 }
 0x1fa   : > { %v3568_v33 = vadd.f32 %v3567_v12, %v3566_v58  ;;  %v3686_v34 = vadd.f32 %v3685_v13, %v3684_v5  ;;  %v3569_v51 = vpop.f32.mrb[18].mxu1  ;;  %v3687_v52 = vpop.f32.mrb[94].mxu0 }
 0x1fb   : > { %v3570_v9 = vpop.f32.mrb[19].mxu1  ;;  %v3688_v10 = vpop.f32.mrb[95].mxu0 }
 0x1fc   : > { %v4616_v26 = vadd.f32 %v3680_v55, %v3568_v33  ;;  %v3571_v27 = vadd.f32 %v3570_v9, %v3569_v51  ;;  %v3689_v42 = vadd.f32 %v3688_v10, %v3687_v52 }
 0x1fd   : > { %1745 = vmatmul.mubr.bf16.gmra.mrb[124].mxu1 %v4070_v3 }
 0x1fe   : > { %v4619_v57 = vadd.f32 %v3683_v4, %v3571_v27 }
 0x200   : > { %v3572_v43 = vpop.f32.mrb[20].mxu1  ;;  %v3690_v59 = vpop.f32.mrb[96].mxu0 }
 0x201   : > { %v3573_v14 = vpop.f32.mrb[21].mxu1  ;;  %v3691_v15 = vpop.f32.mrb[97].mxu0 }
 0x202   : > { %v3574_v31 = vadd.f32 %v3573_v14, %v3572_v43  ;;  %v3692_v48 = vadd.f32 %v3691_v15, %v3690_v59  ;;  %v3575_v49 = vpop.f32.mrb[22].mxu1  ;;  %v3693_v6 = vpop.f32.mrb[98].mxu0 }
 0x203   : > { %v3576_v7 = vpop.f32.mrb[23].mxu1  ;;  %v3694_v24 = vpop.f32.mrb[99].mxu0 }
 0x204   : > { %v4621_v25 = vadd.f32 %v3686_v34, %v3574_v31  ;;  %v3577_v47 = vadd.f32 %v3576_v7, %v3575_v49  ;;  %v3695_v16 = vadd.f32 %v3694_v24, %v3693_v6 }
 0x206   : > { %v4623_v17 = vadd.f32 %v3689_v42, %v3577_v47 }
 0x208   : > { %v3578_v19 = vpop.f32.mrb[24].mxu1  ;;  %v3696_v3 = vpop.f32.mrb[100].mxu0 }
 0x209   : > { %v3579_v20 = vpop.f32.mrb[25].mxu1  ;;  %v3697_v11 = vpop.f32.mrb[101].mxu0 }
 0x20a   : > { %v3580_v21 = vadd.f32 %v3579_v20, %v3578_v19  ;;  %v3698_v22 = vadd.f32 %v3697_v11, %v3696_v3  ;;  %v3581_v23 = vpop.f32.mrb[26].mxu1  ;;  %v3699_v28 = vpop.f32.mrb[102].mxu0 }
 0x20b   : > { %v3582_v29 = vpop.f32.mrb[27].mxu1  ;;  %v3700_v36 = vpop.f32.mrb[103].mxu0 }
 0x20c   : > { %v4625_v37 = vadd.f32 %v3692_v48, %v3580_v21  ;;  %v3583_v38 = vadd.f32 %v3582_v29, %v3581_v23  ;;  %v3701_v39 = vadd.f32 %v3700_v36, %v3699_v28 }
 0x20e   : > { %v4627_v41 = vadd.f32 %v3695_v16, %v3583_v38 }
 0x210   : > { %v3584_v44 = vpop.f32.mrb[28].mxu1  ;;  %v3702_v35 = vpop.f32.mrb[104].mxu0 }
 0x211   : > { %v3585_v45 = vpop.f32.mrb[29].mxu1  ;;  %v3703_v50 = vpop.f32.mrb[105].mxu0 }
 0x212   : > { %v3586_v53 = vadd.f32 %v3585_v45, %v3584_v44  ;;  %v3704_v54 = vadd.f32 %v3703_v50, %v3702_v35  ;;  %v3587_v55 = vpop.f32.mrb[30].mxu1  ;;  %v3705_v61 = vpop.f32.mrb[106].mxu0 }
 0x213   : > { %v3588_v62 = vpop.f32.mrb[31].mxu1  ;;  %v3706_v0 = vpop.f32.mrb[107].mxu0 }
 0x214   : > { %v4629_v63 = vadd.f32 %v3698_v22, %v3586_v53  ;;  %v3589_v1 = vadd.f32 %v3588_v62, %v3587_v55  ;;  %v3707_v4 = vadd.f32 %v3706_v0, %v3705_v61 }
 0x216   : > { %v4631_v58 = vadd.f32 %v3701_v39, %v3589_v1 }
 0x218   : > { %v3590_v5 = vpop.f32.mrb[32].mxu1  ;;  %v3708_v12 = vpop.f32.mrb[108].mxu0 }
 0x219   : > { %v3591_v13 = vpop.f32.mrb[33].mxu1  ;;  %v3709_v33 = vpop.f32.mrb[109].mxu0 }
 0x21a   : > { %v3592_v34 = vadd.f32 %v3591_v13, %v3590_v5  ;;  %v3710_v51 = vadd.f32 %v3709_v33, %v3708_v12  ;;  %v3593_v52 = vpop.f32.mrb[34].mxu1  ;;  %v3711_v9 = vpop.f32.mrb[110].mxu0 }
 0x21b   : > { %v3594_v10 = vpop.f32.mrb[35].mxu1  ;;  %v3712_v27 = vpop.f32.mrb[111].mxu0 }
 0x21c   : > { %v4633_v42 = vadd.f32 %v3704_v54, %v3592_v34  ;;  %v3595_v43 = vadd.f32 %v3594_v10, %v3593_v52  ;;  %v3713_v59 = vadd.f32 %v3712_v27, %v3711_v9 }
 0x21e   : > { %v4635_v14 = vadd.f32 %v3707_v4, %v3595_v43 }
 0x220   : > { %v3596_v15 = vpop.f32.mrb[36].mxu1  ;;  %v3714_v31 = vpop.f32.mrb[112].mxu0 }
 0x221   : > { %v3597_v48 = vpop.f32.mrb[37].mxu1  ;;  %v3715_v49 = vpop.f32.mrb[113].mxu0 }
 0x222   : > { %v3598_v6 = vadd.f32 %v3597_v48, %v3596_v15  ;;  %v3716_v7 = vadd.f32 %v3715_v49, %v3714_v31  ;;  %v3599_v24 = vpop.f32.mrb[38].mxu1  ;;  %v3717_v47 = vpop.f32.mrb[114].mxu0 }
 0x223   : > { %v3600_v16 = vpop.f32.mrb[39].mxu1  ;;  %v3718_v19 = vpop.f32.mrb[115].mxu0 }
 0x224   : > { %v4637_v3 = vadd.f32 %v3710_v51, %v3598_v6  ;;  %v3601_v20 = vadd.f32 %v3600_v16, %v3599_v24  ;;  %v3719_v11 = vadd.f32 %v3718_v19, %v3717_v47 }
 0x226   : > { %v4639_v21 = vadd.f32 %v3713_v59, %v3601_v20 }
 0x228   : > { %v3602_v22 = vpop.f32.mrb[40].mxu1  ;;  %v3720_v23 = vpop.f32.mrb[116].mxu0 }
 0x229   : > { %v3603_v28 = vpop.f32.mrb[41].mxu1  ;;  %v3721_v29 = vpop.f32.mrb[117].mxu0 }
 0x22a   : > { %v3604_v36 = vadd.f32 %v3603_v28, %v3602_v22  ;;  %v3722_v38 = vadd.f32 %v3721_v29, %v3720_v23  ;;  %v3605_v39 = vpop.f32.mrb[42].mxu1  ;;  %v3723_v44 = vpop.f32.mrb[118].mxu0 }
 0x22b   : > { %v3606_v35 = vpop.f32.mrb[43].mxu1  ;;  %v3724_v45 = vpop.f32.mrb[119].mxu0 }
 0x22c   : > { %v4641_v50 = vadd.f32 %v3716_v7, %v3604_v36  ;;  %v3607_v53 = vadd.f32 %v3606_v35, %v3605_v39  ;;  %v3725_v54 = vadd.f32 %v3724_v45, %v3723_v44 }
 0x22e   : > { %v4643_v55 = vadd.f32 %v3719_v11, %v3607_v53 }
 0x230   : > { %v3608_v61 = vpop.f32.mrb[44].mxu1  ;;  %v3726_v62 = vpop.f32.mrb[120].mxu0 }
 0x231   : > { %v3609_v0 = vpop.f32.mrb[45].mxu1  ;;  %v3727_v1 = vpop.f32.mrb[121].mxu0 }
 0x232   : > { %v3610_v4 = vadd.f32 %v3609_v0, %v3608_v61  ;;  %v3728_v5 = vadd.f32 %v3727_v1, %v3726_v62  ;;  %v3611_v12 = vpop.f32.mrb[46].mxu1  ;;  %v3729_v13 = vpop.f32.mrb[122].mxu0 }
 0x233   : > { %v3612_v33 = vpop.f32.mrb[47].mxu1  ;;  %v3730_v34 = vpop.f32.mrb[123].mxu0 }
 0x234   : > { %v4645_v51 = vadd.f32 %v3722_v38, %v3610_v4  ;;  %v3613_v52 = vadd.f32 %v3612_v33, %v3611_v12  ;;  %v3731_v9 = vadd.f32 %v3730_v34, %v3729_v13 }
 0x236   : > { %v4647_v10 = vadd.f32 %v3725_v54, %v3613_v52 }
 0x238   : > { %v3614_v27 = vpop.f32.mrb[48].mxu1  ;;  %v3732_v43 = vpop.f32.mrb[124].mxu0 }
 0x239   : > { %v3615_v59 = vpop.f32.mrb[49].mxu1  ;;  %v3733_v15 = vpop.f32.mrb[125].mxu0 }
 0x23a   : > { %v3616_v31 = vadd.f32 %v3615_v59, %v3614_v27  ;;  %v3734_v48 = vadd.f32 %v3733_v15, %v3732_v43  ;;  %v3617_v49 = vpop.f32.mrb[50].mxu1  ;;  %v3735_v6 = vpop.f32.mrb[126].mxu0 }
 0x23b   : > { %v3618_v7 = vpop.f32.mrb[51].mxu1  ;;  %v3736_v24 = vpop.f32.mrb[127].mxu0 }
 0x23c   : > { %v4649_v47 = vadd.f32 %v3728_v5, %v3616_v31  ;;  %v3619_v16 = vadd.f32 %v3618_v7, %v3617_v49  ;;  %v3737_v19 = vadd.f32 %v3736_v24, %v3735_v6 }
 0x23e   : > { %v4651_v20 = vadd.f32 %v3731_v9, %v3619_v16 }
 0x240   : > { %v3620_v11 = vpop.f32.mrb[52].mxu1  ;;  %v3738_v22 = vpop.f32.mrb[128].mxu0 }
 0x241   : > { %v3621_v23 = vpop.f32.mrb[53].mxu1  ;;  %v3739_v28 = vpop.f32.mrb[129].mxu0 }
 0x242   : > { %v3622_v29 = vadd.f32 %v3621_v23, %v3620_v11  ;;  %v3740_v36 = vadd.f32 %v3739_v28, %v3738_v22  ;;  %v3623_v38 = vpop.f32.mrb[54].mxu1  ;;  %v3741_v39 = vpop.f32.mrb[130].mxu0 }
 0x243   : > { %v3624_v44 = vpop.f32.mrb[55].mxu1  ;;  %v3742_v35 = vpop.f32.mrb[131].mxu0 }
 0x244   : > { %v4653_v45 = vadd.f32 %v3734_v48, %v3622_v29  ;;  %v3625_v53 = vadd.f32 %v3624_v44, %v3623_v38  ;;  %v3743_v54 = vadd.f32 %v3742_v35, %v3741_v39  ;;  %v1788_v39 = vadd.s32 16, %v4327_v56 }
 0x246   : > { %v4655_v61 = vadd.f32 %v3737_v19, %v3625_v53 }
 0x248   : > { %v3626_v62 = vpop.f32.mrb[56].mxu1  ;;  %v3744_v0 = vpop.f32.mrb[132].mxu0 }
 0x249   : > { %v3627_v1 = vpop.f32.mrb[57].mxu1  ;;  %v3745_v4 = vpop.f32.mrb[133].mxu0 }
 0x24a   : > { %v3628_v5 = vadd.f32 %v3627_v1, %v3626_v62  ;;  %v3746_v12 = vadd.f32 %v3745_v4, %v3744_v0  ;;  %v3629_v13 = vpop.f32.mrb[58].mxu1  ;;  %v3747_v33 = vpop.f32.mrb[134].mxu0  ;;  %v1836_v0 = vand.u32 15, %v1788_v39 }
 0x24b   : > { %v3630_v34 = vpop.f32.mrb[59].mxu1  ;;  %v3748_v52 = vpop.f32.mrb[135].mxu0 }
 0x24c   : > { %v4657_v9 = vadd.f32 %v3740_v36, %v3628_v5  ;;  %v3631_v27 = vadd.f32 %v3630_v34, %v3629_v13  ;;  %v3749_v43 = vadd.f32 %v3748_v52, %v3747_v33  ;;  %vm2204_vm3 = vcmp.ne.s32.totalorder %v1836_v0, 0 }
 0x24d   : > { %v1790_v33 = vadd.s32 32, %v4327_v56 }
 0x24e   : > { %v4659_v59 = vadd.f32 %v3743_v54, %v3631_v27 }
 0x250   : > { %v3632_v15 = vpop.f32.mrb[60].mxu1 }
 0x251   : > { %v3633_v31 = vpop.f32.mrb[61].mxu1 }
 0x252   : > { %v3634_v48 = vadd.f32 %v3633_v31, %v3632_v15  ;;  %v3635_v49 = vpop.f32.mrb[62].mxu1 }
 0x253   : > { %v3636_v6 = vpop.f32.mrb[63].mxu1 }
 0x254   : > { %v4661_v7 = vadd.f32 %v3746_v12, %v3634_v48  ;;  %v3637_v24 = vadd.f32 %v3636_v6, %v3635_v49 }
 0x256   : > { %v4663_v16 = vadd.f32 %v3749_v43, %v3637_v24  ;;  %v1792_v24 = vadd.s32 48, %v4327_v56 }
 0x258   : > { %v3766_v19 = vpop.f32.mrb[64].mxu1  ;;  %v1864_v39 = vand.u32 15, %v1792_v24 }
 0x259   : > { %v3767_v11 = vpop.f32.mrb[65].mxu1 }
 0x25a   : > { %v3768_v22 = vadd.f32 %v3767_v11, %v3766_v19  ;;  %v3769_v23 = vpop.f32.mrb[66].mxu1  ;;  %vm2208_vm5 = vcmp.ne.s32.totalorder %v1864_v39, 0 }
 0x25b   : > { %v3770_v28 = vpop.f32.mrb[67].mxu1 }
 0x25c   : > { %v4666_v29 = vadd.f32 %v3768_v22, %v4592_v60  ;;  %v3771_v36 = vadd.f32 %v3770_v28, %v3769_v23 }
 0x25e   : > { %v4669_v38 = vadd.f32 %v3771_v36, %v4595_v30  ;;  %2459 = vrot.lane.b32.xlu0 %v4666_v29, %s4072_s14  ;;  %v2234_v35 = vrot.slane %v4666_v29, 7 }
 0x260   : > { %v3772_v44 = vpop.f32.mrb[68].mxu1  ;;  %v2235_v53 = vrot.slane %v4669_v38, 7 }
 0x261   : > { %v3773_v54 = vpop.f32.mrb[69].mxu1 }
 0x262   : > { %v3774_v60 = vadd.f32 %v3773_v54, %v3772_v44  ;;  %v3775_v62 = vpop.f32.mrb[70].mxu1  ;;  %2461 = vrot.lane.b32.xlu0 %v4669_v38, %s4072_s14  ;;  %v2297_v30 = vsel %vm2266_vm2, %v2234_v35, %v2235_v53 }
 0x263   : > { %v3776_v1 = vpop.f32.mrb[71].mxu1  ;;  %2750 = vrot.lane.b32.xlu1 %v2297_v30, %s4071_s12 }
 0x264   : > { %v4685_v4 = vadd.f32 %v3774_v60, %v4598_v18  ;;  %v3777_v5 = vadd.f32 %v3776_v1, %v3775_v62 }
 0x266   : > { %v2236_v12 = vrot.slane %v4685_v4, 7  ;;  %v4689_v13 = vadd.f32 %v3777_v5, %v4601_v46  ;;  %v1850_v46 = vand.u32 15, %v1790_v33  ;;  %v1794_v5 = vadd.s32 64, %v4327_v56 }
 0x267   : > { %2463 = vrot.lane.b32.xlu1 %v4685_v4, %s4072_s14 }
 0x268   : > { %v3778_v34 = vpop.f32.mrb[72].mxu1  ;;  %v2296_v52 = vsel %vm2266_vm2, %v2235_v53, %v2236_v12  ;;  %v2237_v31 = vrot.slane %v4689_v13, 7  ;;  %vm2206_vm4 = vcmp.ne.s32.totalorder %v1850_v46, 0  ;;  %v1796_v46 = vadd.s32 80, %v4327_v56 }
 0x269   : > { %v3779_v27 = vpop.f32.mrb[73].mxu1  ;;  %v2365_v43 = vsel %vm2204_vm3, %v2296_v52, 0.0 }
 0x26a   : > { %v3780_v18 = vadd.f32 %v3779_v27, %v3778_v34  ;;  %v3781_v15 = vpop.f32.mrb[74].mxu1  ;;  %2752 = vrot.lane.b32.xlu0 %v2365_v43, %s4071_s12  ;;  %v2295_v22 = vsel %vm2266_vm2, %v2236_v12, %v2237_v31  ;;  %v1878_v43 = vand.u32 15, %v1794_v5 }
 0x26b   : > { %v3782_v48 = vpop.f32.mrb[75].mxu1  ;;  %2465 = vrot.lane.b32.xlu1 %v4689_v13, %s4072_s14 }
 0x26c   : > { %v4701_v49 = vadd.f32 %v3780_v18, %v4604_v40  ;;  %v3783_v6 = vadd.f32 %v3782_v48, %v3781_v15  ;;  %vm2210_vm6 = vcmp.ne.s32.totalorder %v1878_v43, 0  ;;  %v1800_v43 = vadd.s32 112, %v4327_v56 }
 0x26e   : > { %v2238_v19 = vrot.slane %v4701_v49, 7  ;;  %v4706_v11 = vadd.f32 %v3783_v6, %v4607_v8  ;;  %2467 = vrot.lane.b32.xlu0 %v4701_v49, %s4072_s14 }
 0x26f   : > { %2754 = vrot.lane.b32.xlu1 %v2295_v22, %s4071_s12 }
 0x270   : > { %v3784_v23 = vpop.f32.mrb[76].mxu1  ;;  %v2294_v40 = vsel %vm2266_vm2, %v2237_v31, %v2238_v19  ;;  %v2239_v8 = vrot.slane %v4706_v11, 7 }
 0x271   : > { %v3785_v28 = vpop.f32.mrb[77].mxu1  ;;  %v2367_v36 = vsel %vm2206_vm4, %v2294_v40, 0.0  ;;  %v1892_v40 = vand.u32 15, %v1796_v46 }
 0x272   : > { %v3786_v44 = vadd.f32 %v3785_v28, %v3784_v23  ;;  %v3787_v53 = vpop.f32.mrb[78].mxu1  ;;  %2756 = vrot.lane.b32.xlu0 %v2367_v36, %s4071_s12  ;;  %v2293_v1 = vsel %vm2266_vm2, %v2238_v19, %v2239_v8 }
 0x273   : > { %v3788_v54 = vpop.f32.mrb[79].mxu1  ;;  %2469 = vrot.lane.b32.xlu1 %v4706_v11, %s4072_s14  ;;  %vm2212_vm7 = vcmp.ne.s32.totalorder %v1892_v40, 0 }
 0x274   : > { %v4720_v60 = vadd.f32 %v3786_v44, %v4610_v2  ;;  %v3789_v62 = vadd.f32 %v3788_v54, %v3787_v53 }
 0x276   : > { %v2240_v30 = vrot.slane %v4720_v60, 7  ;;  %v4724_v0 = vadd.f32 %v3789_v62, %v4613_v32  ;;  %2471 = vrot.lane.b32.xlu0 %v4720_v60, %s4072_s14 }
 0x277   : > { %2758 = vrot.lane.b32.xlu1 %v2293_v1, %s4071_s12 }
 0x278   : > { %v3790_v12 = vpop.f32.mrb[80].mxu1  ;;  %v2292_v2 = vsel %vm2266_vm2, %v2239_v8, %v2240_v30  ;;  %v2241_v32 = vrot.slane %v4724_v0, 7 }
 0x279   : > { %v3791_v33 = vpop.f32.mrb[81].mxu1  ;;  %v2369_v34 = vsel %vm2208_vm5, %v2292_v2, 0.0 }
 0x27a   : > { %v3792_v52 = vadd.f32 %v3791_v33, %v3790_v12  ;;  %v3793_v27 = vpop.f32.mrb[82].mxu1  ;;  %2760 = vrot.lane.b32.xlu0 %v2369_v34, %s4071_s12  ;;  %v2291_v24 = vsel %vm2266_vm2, %v2240_v30, %v2241_v32  ;;  %v1798_v30 = vadd.s32 96, %v4327_v56 }
 0x27b   : > { %v3794_v18 = vpop.f32.mrb[83].mxu1  ;;  %2473 = vrot.lane.b32.xlu1 %v4724_v0, %s4072_s14 }
 0x27c   : > { %v4739_v15 = vadd.f32 %v3792_v52, %v4616_v26  ;;  %v3795_v31 = vadd.f32 %v3794_v18, %v3793_v27  ;;  %v1906_v34 = vand.u32 15, %v1798_v30 }
 0x27e   : > { %v2242_v48 = vrot.slane %v4739_v15, 7  ;;  %v4744_v6 = vadd.f32 %v3795_v31, %v4619_v57  ;;  %2475 = vrot.lane.b32.xlu0 %v4739_v15, %s4072_s14  ;;  %vm2214_vm8 = vcmp.ne.s32.totalorder %v1906_v34, 0  ;;  %v1804_v34 = vadd.s32 144, %v4327_v56 }
 0x27f   : > { %2762 = vrot.lane.b32.xlu1 %v2291_v24, %s4071_s12 }
 0x280   : > { %v3796_v19 = vpop.f32.mrb[84].mxu1  ;;  %v2290_v26 = vsel %vm2266_vm2, %v2241_v32, %v2242_v48  ;;  %v2243_v57 = vrot.slane %v4744_v6, 7 }
 0x281   : > { %v3797_v22 = vpop.f32.mrb[85].mxu1  ;;  %v2371_v23 = vsel %vm2210_vm6, %v2290_v26, 0.0  ;;  %v1920_v26 = vand.u32 15, %v1800_v43 }
 0x282   : > { %v3798_v28 = vadd.f32 %v3797_v22, %v3796_v19  ;;  %v3799_v36 = vpop.f32.mrb[86].mxu1  ;;  %2764 = vrot.lane.b32.xlu0 %v2371_v23, %s4071_s12  ;;  %v2289_v62 = vsel %vm2266_vm2, %v2242_v48, %v2243_v57 }
 0x283   : > { %v3800_v39 = vpop.f32.mrb[87].mxu1  ;;  %2477 = vrot.lane.b32.xlu1 %v4744_v6, %s4072_s14  ;;  %vm2216_vm9 = vcmp.ne.s32.totalorder %v1920_v26, 0 }
 0x284   : > { %v4758_v44 = vadd.f32 %v3798_v28, %v4621_v25  ;;  %v3801_v53 = vadd.f32 %v3800_v39, %v3799_v36 }
 0x286   : > { %v2244_v8 = vrot.slane %v4758_v44, 7  ;;  %v4762_v54 = vadd.f32 %v3801_v53, %v4623_v17  ;;  %2479 = vrot.lane.b32.xlu0 %v4758_v44, %s4072_s14 }
 0x287   : > { %2766 = vrot.lane.b32.xlu1 %v2289_v62, %s4071_s12 }
 0x288   : > { %v3802_v1 = vpop.f32.mrb[88].mxu1  ;;  %v2288_v25 = vsel %vm2266_vm2, %v2243_v57, %v2244_v8  ;;  %v2245_v17 = vrot.slane %v4762_v54, 7 }
 0x289   : > { %v3803_v5 = vpop.f32.mrb[89].mxu1  ;;  %v2373_v12 = vsel %vm2212_vm7, %v2288_v25, 0.0 }
 0x28a   : > { %v3804_v2 = vadd.f32 %v3803_v5, %v3802_v1  ;;  %v3805_v33 = vpop.f32.mrb[90].mxu1  ;;  %2768 = vrot.lane.b32.xlu0 %v2373_v12, %s4071_s12  ;;  %v2287_v46 = vsel %vm2266_vm2, %v2244_v8, %v2245_v17  ;;  %v1802_v8 = vadd.s32 128, %v4327_v56 }
 0x28b   : > { %v3806_v52 = vpop.f32.mrb[91].mxu1  ;;  %2481 = vrot.lane.b32.xlu1 %v4762_v54, %s4072_s14 }
 0x28c   : > { %v4777_v27 = vadd.f32 %v3804_v2, %v4625_v37  ;;  %v3807_v32 = vadd.f32 %v3806_v52, %v3805_v33  ;;  %v1934_v12 = vand.u32 15, %v1802_v8 }
 0x28e   : > { %v2246_v18 = vrot.slane %v4777_v27, 7  ;;  %v4782_v31 = vadd.f32 %v3807_v32, %v4627_v41  ;;  %2483 = vrot.lane.b32.xlu0 %v4777_v27, %s4072_s14  ;;  %vm2218_vm10 = vcmp.ne.s32.totalorder %v1934_v12, 0  ;;  %v1808_v12 = vadd.s32 176, %v4327_v56 }
 0x28f   : > { %2770 = vrot.lane.b32.xlu1 %v2287_v46, %s4071_s12 }
 0x290   : > { %v3808_v48 = vpop.f32.mrb[92].mxu1  ;;  %v2286_v37 = vsel %vm2266_vm2, %v2245_v17, %v2246_v18  ;;  %v2247_v41 = vrot.slane %v4782_v31, 7 }
 0x291   : > { %v3809_v24 = vpop.f32.mrb[93].mxu1  ;;  %v2375_v19 = vsel %vm2214_vm8, %v2286_v37, 0.0  ;;  %v1948_v37 = vand.u32 15, %v1804_v34 }
 0x292   : > { %v3810_v22 = vadd.f32 %v3809_v24, %v3808_v48  ;;  %v3811_v23 = vpop.f32.mrb[94].mxu1  ;;  %2772 = vrot.lane.b32.xlu0 %v2375_v19, %s4071_s12  ;;  %v2285_v53 = vsel %vm2266_vm2, %v2246_v18, %v2247_v41 }
 0x293   : > { %v3812_v40 = vpop.f32.mrb[95].mxu1  ;;  %2485 = vrot.lane.b32.xlu1 %v4782_v31, %s4072_s14  ;;  %vm2220_vm11 = vcmp.ne.s32.totalorder %v1948_v37, 0 }
 0x294   : > { %v4796_v28 = vadd.f32 %v3810_v22, %v4629_v63  ;;  %v3813_v36 = vadd.f32 %v3812_v40, %v3811_v23 }
 0x296   : > { %v2248_v57 = vrot.slane %v4796_v28, 7  ;;  %v4800_v39 = vadd.f32 %v3813_v36, %v4631_v58  ;;  %2487 = vrot.lane.b32.xlu0 %v4796_v28, %s4072_s14 }
 0x297   : > { %2774 = vrot.lane.b32.xlu1 %v2285_v53, %s4071_s12 }
 0x298   : > { %v3814_v62 = vpop.f32.mrb[96].mxu1  ;;  %v2284_v63 = vsel %vm2266_vm2, %v2247_v41, %v2248_v57  ;;  %v2249_v58 = vrot.slane %v4800_v39, 7 }
 0x299   : > { %v3815_v30 = vpop.f32.mrb[97].mxu1  ;;  %v2377_v1 = vsel %vm2216_vm9, %v2284_v63, 0.0 }
 0x29a   : > { %v3816_v25 = vadd.f32 %v3815_v30, %v3814_v62  ;;  %v3817_v5 = vpop.f32.mrb[98].mxu1  ;;  %2776 = vrot.lane.b32.xlu0 %v2377_v1, %s4071_s12  ;;  %v2283_v43 = vsel %vm2266_vm2, %v2248_v57, %v2249_v58  ;;  %v1806_v57 = vadd.s32 160, %v4327_v56 }
 0x29b   : > { %v3818_v2 = vpop.f32.mrb[99].mxu1  ;;  %2489 = vrot.lane.b32.xlu1 %v4800_v39, %s4072_s14 }
 0x29c   : > { %v4815_v33 = vadd.f32 %v3816_v25, %v4633_v42  ;;  %v3819_v17 = vadd.f32 %v3818_v2, %v3817_v5  ;;  %v1962_v1 = vand.u32 15, %v1806_v57 }
 0x29e   : > { %v2250_v52 = vrot.slane %v4815_v33, 7  ;;  %v4820_v32 = vadd.f32 %v3819_v17, %v4635_v14  ;;  %2491 = vrot.lane.b32.xlu0 %v4815_v33, %s4072_s14  ;;  %vm2222_vm12 = vcmp.ne.s32.totalorder %v1962_v1, 0  ;;  %v1812_v1 = vadd.s32 208, %v4327_v56 }
 0x29f   : > { %2778 = vrot.lane.b32.xlu1 %v2283_v43, %s4071_s12 }
 0x2a0   : > { %v3820_v18 = vpop.f32.mrb[100].mxu1  ;;  %v2282_v42 = vsel %vm2266_vm2, %v2249_v58, %v2250_v52  ;;  %v2251_v14 = vrot.slane %v4820_v32, 7 }
 0x2a1   : > { %v3821_v46 = vpop.f32.mrb[101].mxu1  ;;  %v2379_v48 = vsel %vm2218_vm10, %v2282_v42, 0.0  ;;  %v1976_v42 = vand.u32 15, %v1808_v12 }
 0x2a2   : > { %v3822_v24 = vadd.f32 %v3821_v46, %v3820_v18  ;;  %v3823_v19 = vpop.f32.mrb[102].mxu1  ;;  %2780 = vrot.lane.b32.xlu0 %v2379_v48, %s4071_s12  ;;  %v2281_v36 = vsel %vm2266_vm2, %v2250_v52, %v2251_v14 }
 0x2a3   : > { %v3824_v26 = vpop.f32.mrb[103].mxu1  ;;  %2493 = vrot.lane.b32.xlu1 %v4820_v32, %s4072_s14  ;;  %vm2224_vm13 = vcmp.ne.s32.totalorder %v1976_v42, 0 }
 0x2a4   : > { %v4834_v22 = vadd.f32 %v3822_v24, %v4637_v3  ;;  %v3825_v23 = vadd.f32 %v3824_v26, %v3823_v19 }
 0x2a6   : > { %v2252_v41 = vrot.slane %v4834_v22, 7  ;;  %v4838_v40 = vadd.f32 %v3825_v23, %v4639_v21  ;;  %2495 = vrot.lane.b32.xlu0 %v4834_v22, %s4072_s14 }
 0x2a7   : > { %2782 = vrot.lane.b32.xlu1 %v2281_v36, %s4071_s12 }
 0x2a8   : > { %v3826_v53 = vpop.f32.mrb[104].mxu1  ;;  %v2280_v3 = vsel %vm2266_vm2, %v2251_v14, %v2252_v41  ;;  %v2253_v21 = vrot.slane %v4838_v40, 7 }
 0x2a9   : > { %v3827_v8 = vpop.f32.mrb[105].mxu1  ;;  %v2381_v62 = vsel %vm2220_vm11, %v2280_v3, 0.0 }
 0x2aa   : > { %v3828_v63 = vadd.f32 %v3827_v8, %v3826_v53  ;;  %v3829_v30 = vpop.f32.mrb[106].mxu1  ;;  %2784 = vrot.lane.b32.xlu0 %v2381_v62, %s4071_s12  ;;  %v2279_v34 = vsel %vm2266_vm2, %v2252_v41, %v2253_v21  ;;  %v1810_v41 = vadd.s32 192, %v4327_v56 }
 0x2ab   : > { %v3830_v25 = vpop.f32.mrb[107].mxu1  ;;  %2497 = vrot.lane.b32.xlu1 %v4838_v40, %s4072_s14 }
 0x2ac   : > { %v4853_v5 = vadd.f32 %v3828_v63, %v4641_v50  ;;  %v3831_v58 = vadd.f32 %v3830_v25, %v3829_v30  ;;  %v1990_v62 = vand.u32 15, %v1810_v41 }
 0x2ae   : > { %v2254_v2 = vrot.slane %v4853_v5, 7  ;;  %v4858_v17 = vadd.f32 %v3831_v58, %v4643_v55  ;;  %2499 = vrot.lane.b32.xlu0 %v4853_v5, %s4072_s14  ;;  %vm2226_vm14 = vcmp.ne.s32.totalorder %v1990_v62, 0 }
 0x2af   : > { %2786 = vrot.lane.b32.xlu1 %v2279_v34, %s4071_s12 }
 0x2b0   : > { %v3832_v52 = vpop.f32.mrb[108].mxu1  ;;  %v2278_v50 = vsel %vm2266_vm2, %v2253_v21, %v2254_v2  ;;  %v2255_v55 = vrot.slane %v4858_v17, 7 }
 0x2b1   : > { %v3833_v43 = vpop.f32.mrb[109].mxu1  ;;  %v2383_v18 = vsel %vm2222_vm12, %v2278_v50, 0.0  ;;  %v2004_v50 = vand.u32 15, %v1812_v1 }
 0x2b2   : > { %v3834_v46 = vadd.f32 %v3833_v43, %v3832_v52  ;;  %v3835_v48 = vpop.f32.mrb[110].mxu1  ;;  %2788 = vrot.lane.b32.xlu0 %v2383_v18, %s4071_s12  ;;  %v2277_v23 = vsel %vm2266_vm2, %v2254_v2, %v2255_v55 }
 0x2b3   : > { %v3836_v37 = vpop.f32.mrb[111].mxu1  ;;  %2501 = vrot.lane.b32.xlu1 %v4858_v17, %s4072_s14  ;;  %vm2228_vm15 = vcmp.ne.s32.totalorder %v2004_v50, 0  ;;  %v1816_v50 = vadd.s32 240, %v4327_v56 }
 0x2b4   : > { %v4872_v24 = vadd.f32 %v3834_v46, %v4645_v51  ;;  %v3837_v19 = vadd.f32 %v3836_v37, %v3835_v48 }
 0x2b6   : > { %v2256_v14 = vrot.slane %v4872_v24, 7  ;;  %v4876_v26 = vadd.f32 %v3837_v19, %v4647_v10  ;;  %2503 = vrot.lane.b32.xlu0 %v4872_v24, %s4072_s14 }
 0x2b7   : > { %2790 = vrot.lane.b32.xlu1 %v2277_v23, %s4071_s12 }
 0x2b8   : > { %v3838_v36 = vpop.f32.mrb[112].mxu1  ;;  %v2276_v51 = vsel %vm2266_vm2, %v2255_v55, %v2256_v14  ;;  %v2257_v10 = vrot.slane %v4876_v26, 7 }
 0x2b9   : > { %v3839_v57 = vpop.f32.mrb[113].mxu1  ;;  %v2385_v53 = vsel %vm2224_vm13, %v2276_v51, 0.0 }
 0x2ba   : > { %v3840_v3 = vadd.f32 %v3839_v57, %v3838_v36  ;;  %v3841_v8 = vpop.f32.mrb[114].mxu1  ;;  %2792 = vrot.lane.b32.xlu0 %v2385_v53, %s4071_s12  ;;  %v2275_v12 = vsel %vm2266_vm2, %v2256_v14, %v2257_v10  ;;  %v1814_v14 = vadd.s32 224, %v4327_v56 }
 0x2bb   : > { %v3842_v63 = vpop.f32.mrb[115].mxu1  ;;  %2505 = vrot.lane.b32.xlu1 %v4876_v26, %s4072_s14 }
 0x2bc   : > { %v4891_v30 = vadd.f32 %v3840_v3, %v4649_v47  ;;  %v3843_v21 = vadd.f32 %v3842_v63, %v3841_v8  ;;  %v2018_v3 = vand.u32 15, %v1814_v14 }
 0x2be   : > { %5428 = vst [vmem:[#allocation6_spill] sm:$0xff] %v4891_v30  ;;  %v2258_v25 = vrot.slane %v4891_v30, 7  ;;  %v4896_v58 = vadd.f32 %v3843_v21, %v4651_v20  ;;  %2507 = vrot.lane.b32.xlu0 %v4891_v30, %s4072_s14  ;;  %vm2230_vm0 = vcmp.ne.s32.totalorder %v2018_v3, 0 }
 0x2bf   : > { %2794 = vrot.lane.b32.xlu1 %v2275_v12, %s4071_s12 }
 0x2c0   : > { %5429 = vst [vmem:[#allocation7_spill] sm:$0xff] %v4896_v58  ;;  %v3844_v2 = vpop.f32.mrb[116].mxu1  ;;  %v2274_v47 = vsel %vm2266_vm2, %v2257_v10, %v2258_v25  ;;  %v2259_v20 = vrot.slane %v4896_v58, 7 }
 0x2c1   : > { %v3845_v34 = vpop.f32.mrb[117].mxu1  ;;  %v2387_v52 = vsel %vm2226_vm14, %v2274_v47, 0.0 }
 0x2c2   : > { %v3846_v43 = vadd.f32 %v3845_v34, %v3844_v2  ;;  %v3847_v18 = vpop.f32.mrb[118].mxu1  ;;  %2796 = vrot.lane.b32.xlu0 %v2387_v52, %s4071_s12  ;;  %v2273_v19 = vsel %vm2266_vm2, %v2258_v25, %v2259_v20 }
 0x2c3   : > { %v3848_v42 = vpop.f32.mrb[119].mxu1  ;;  %2509 = vrot.lane.b32.xlu1 %v4896_v58, %s4072_s14 }
 0x2c4   : > { %v4910_v46 = vadd.f32 %v3846_v43, %v4653_v45  ;;  %v3849_v48 = vadd.f32 %v3848_v42, %v3847_v18 }
 0x2c6   : > { %5430 = vst [vmem:[#allocation8_spill] sm:$0xff] %v4910_v46  ;;  %v2260_v55 = vrot.slane %v4910_v46, 7  ;;  %v4914_v37 = vadd.f32 %v3849_v48, %v4655_v61  ;;  %2511 = vrot.lane.b32.xlu0 %v4910_v46, %s4072_s14  ;;  %v4925_v61 = vpop.permute.xlu0 %3042 }
 0x2c7   : > { %2798 = vrot.lane.b32.xlu1 %v2273_v19, %s4071_s12 }
 0x2c8   : > { %5431 = vst [vmem:[#allocation9_spill] sm:$0xff] %v4914_v37  ;;  %v3850_v23 = vpop.f32.mrb[120].mxu1  ;;  %v2272_v45 = vsel %vm2266_vm2, %v2259_v20, %v2260_v55  ;;  %v2261_v53 = vrot.slane %v4914_v37, 7 }
 0x2c9   : > { %v3851_v41 = vpop.f32.mrb[121].mxu1  ;;  %v2389_v36 = vsel %vm2228_vm15, %v2272_v45, 0.0 }
 0x2ca   : > { %v3852_v51 = vadd.f32 %v3851_v41, %v3850_v23  ;;  %v3853_v57 = vpop.f32.mrb[122].mxu1  ;;  %2800 = vrot.lane.b32.xlu0 %v2389_v36, %s4071_s12  ;;  %v2271_v1 = vsel %vm2266_vm2, %v2260_v55, %v2261_v53  ;;  %v1787_v41 = vadd.s32 8, %v4327_v56 }
 0x2cb   : > { %v3854_v8 = vpop.f32.mrb[123].mxu1  ;;  %2513 = vrot.lane.b32.xlu1 %v4914_v37, %s4072_s14 }
 0x2cc   : > { %v4931_v10 = vadd.f32 %v3852_v51, %v4657_v9  ;;  %v3855_v62 = vadd.f32 %v3854_v8, %v3853_v57  ;;  %v1829_v8 = vand.u32 15, %v1787_v41 }
 0x2ce   : > { %5432 = vst [vmem:[#allocation10_spill] sm:$0xff] %v4931_v10  ;;  %v2262_v63 = vrot.slane %v4931_v10, 7  ;;  %v4935_v21 = vadd.f32 %v3855_v62, %v4659_v59  ;;  %2515 = vrot.lane.b32.xlu0 %v4931_v10, %s4072_s14  ;;  %v1789_v62 = vadd.s32 24, %v4327_v56  ;;  %vm2396_vm5 = vcmp.ne.s32.totalorder %v1829_v8, 15 }
 0x2cf   : > { %2802 = vrot.lane.b32.xlu1 %v2271_v1, %s4071_s12 }
 0x2d0   : > { %5433 = vst [vmem:[#allocation11_spill] sm:$0xff] %v4935_v21  ;;  %v3856_v25 = vpop.f32.mrb[124].mxu1  ;;  %v4942_v12 = vpop.permute.xlu0 %2459  ;;  %v2270_v9 = vsel %vm2266_vm2, %v2261_v53, %v2262_v63  ;;  %v2263_v52 = vrot.slane %v4935_v21, 7  ;;  %v1822_v53 = vand.u32 15, %v4327_v56 }
 0x2d1   : > { %v3857_v2 = vpop.f32.mrb[125].mxu1  ;;  %v2391_v47 = vsel %vm2230_vm0, %v2270_v9, 0.0  ;;  %v5417_v45 = vrot.slane %v4942_v12, 1 }
 0x2d2   : > { %v3858_v34 = vadd.f32 %v3857_v2, %v3856_v25  ;;  %v3859_v59 = vpop.f32.mrb[126].mxu1  ;;  %2804 = vrot.lane.b32.xlu0 %v2391_v47, %s4071_s12  ;;  %v2269_v23 = vsel %vm2266_vm2, %v2262_v63, %v2263_v52  ;;  %vm2202_vm4 = vcmp.ne.s32.totalorder %v1822_v53, 0 }
 0x2d3   : > { %v3860_v43 = vpop.f32.mrb[127].mxu1  ;;  %2517 = vrot.lane.b32.xlu1 %v4935_v21, %s4072_s14 }
 0x2d4   : > { %v4952_v18 = vadd.f32 %v3858_v34, %v4661_v7  ;;  %v3861_v20 = vadd.f32 %v3860_v43, %v3859_v59  ;;  %v2462_v42 = vpop.permute.xlu0 %2461  ;;  %v2032_v7 = vand.u32 15, %v1816_v50  ;;  %v1843_v34 = vand.u32 15, %v1789_v62 }
 0x2d5   : > { %v2556_v48 = vrot.slane %v2462_v42, 1  ;;  %v4954_v55 = vpop.permute.xlu1 %2750  ;;  %v1791_v42 = vadd.s32 40, %v4327_v56  ;;  %v1793_v62 = vadd.s32 56, %v4327_v56 }
 0x2d6   : > { %5434 = vst [vmem:[#allocation12_spill] sm:$0xff] %v4952_v18  ;;  %v2264_v19 = vrot.slane %v4952_v18, 7  ;;  %v4959_v14 = vadd.f32 %v3861_v20, %v4663_v16  ;;  %2519 = vrot.lane.b32.xlu0 %v4952_v18, %s4072_s14  ;;  %vm2232_vm3 = vcmp.ne.s32.totalorder %v2032_v7, 0 }
 0x2d7   : > { %2806 = vrot.lane.b32.xlu1 %v2269_v23, %s4071_s12  ;;  %v2618_v16 = vsel %vm2587_vm1, %v5417_v45, %v2556_v48  ;;  %v1857_v41 = vand.u32 15, %v1791_v42 }
 0x2d8   : > { %5435 = vst [vmem:[#allocation13_spill] sm:$0xff] %v4959_v14  ;;  %v2268_v51 = vsel %vm2266_vm2, %v2263_v52, %v2264_v19  ;;  %v2265_v57 = vrot.slane %v4959_v14, 7 }
 0x2d9   : > { %v2464_v36 = vpop.permute.xlu1 %2463  ;;  %v2393_v25 = vsel %vm2232_vm3, %v2268_v51, 0.0  ;;  %vm2400_vm6 = vcmp.ne.s32.totalorder %v1857_v41, 15 }
 0x2da   : > { %2908 = vrot.lane.b32.xlu0 %v2618_v16, %s4071_s12  ;;  %v2557_v3 = vrot.slane %v2464_v36, 1  ;;  %v2267_v9 = vsel %vm2266_vm2, %v2264_v19, %v2265_v57  ;;  %v2298_v2 = vsel %vm2266_vm2, %v2265_v57, %v2234_v35  ;;  %vm2398_vm2 = vcmp.ne.s32.totalorder %v1843_v34, 15 }
 0x2db   : > { %2521 = vrot.lane.b32.xlu1 %v4959_v14, %s4072_s14  ;;  %v2363_v20 = vsel %vm2202_vm4, %v2298_v2, 0.0  ;;  %v1871_v2 = vand.u32 15, %v1793_v62 }
 0x2dc   : > { %v4980_v63 = vpop.permute.xlu0 %2752  ;;  %v2617_v47 = vsel %vm2587_vm1, %v2556_v48, %v2557_v3 }
 0x2dd   : > { %v2466_v1 = vpop.permute.xlu1 %2465  ;;  %v2685_v19 = vsel %vm2396_vm5, %v2617_v47, 0.0  ;;  %vm2402_vm7 = vcmp.ne.s32.totalorder %v1871_v2, 15 }
 0x2de   : > { %2808 = vrot.lane.b32.xlu0 %v2393_v25, %s4071_s12  ;;  %v2558_v52 = vrot.slane %v2466_v1, 1 }
 0x2df   : > { %2810 = vrot.lane.b32.xlu1 %v2267_v9, %s4071_s12 }
 0x2e0   : > { %v2468_v59 = vpop.permute.xlu0 %2467  ;;  %v2616_v7 = vsel %vm2587_vm1, %v2557_v3, %v2558_v52 }
 0x2e1   : > { %v2559_v50 = vrot.slane %v2468_v59, 1  ;;  %v4992_v43 = vpop.permute.xlu1 %2754 }
 0x2e2   : > { %2748 = vrot.lane.b32.xlu0 %v2363_v20, %s4071_s12  ;;  %v1795_v20 = vadd.s32 72, %v4327_v56 }
 0x2e3   : > { %2910 = vrot.lane.b32.xlu1 %v2685_v19, %s4071_s12  ;;  %v2615_v35 = vsel %vm2587_vm1, %v2558_v52, %v2559_v50 }
 0x2e4   : > { %v4999_v23 = vpop.permute.xlu0 %2756  ;;  %v2687_v16 = vsel %vm2398_vm2, %v2615_v35, 0.0 }
 0x2e5   : > { %v2470_v48 = vpop.permute.xlu1 %2469 }
 0x2e6   : > { %v2560_v36 = vrot.slane %v2470_v48, 1  ;;  %2912 = vrot.lane.b32.xlu0 %v2616_v7, %s4071_s12  ;;  %v1885_v7 = vand.u32 15, %v1795_v20 }
 0x2e7   : > { %2914 = vrot.lane.b32.xlu1 %v2687_v16, %s4071_s12 }
 0x2e8   : > { %v2472_v51 = vpop.permute.xlu0 %2471  ;;  %v2614_v57 = vsel %vm2587_vm1, %v2559_v50, %v2560_v36  ;;  %vm2404_vm8 = vcmp.ne.s32.totalorder %v1885_v7, 15 }
 0x2e9   : > { %v2561_v53 = vrot.slane %v2472_v51, 1  ;;  %v5007_v8 = vpop.permute.xlu1 %2758 }
 0x2ea   : > { %2916 = vrot.lane.b32.xlu0 %v2614_v57, %s4071_s12 }
 0x2eb   : > { %v2613_v3 = vsel %vm2587_vm1, %v2560_v36, %v2561_v53 }
 0x2ec   : > { %v5013_v1 = vpop.permute.xlu0 %2760  ;;  %v2689_v25 = vsel %vm2400_vm6, %v2613_v3, 0.0 }
 0x2ed   : > { %2918 = vrot.lane.b32.xlu1 %v2689_v25, %s4071_s12  ;;  %v2474_v9 = vpop.permute.xlu1 %2473 }
 0x2ee   : > { %v2562_v47 = vrot.slane %v2474_v9, 1 }
 0x2f0   : > { %v2476_v34 = vpop.permute.xlu0 %2475  ;;  %v2612_v59 = vsel %vm2587_vm1, %v2561_v53, %v2562_v47  ;;  %v1797_v53 = vadd.s32 88, %v4327_v56 }
 0x2f1   : > { %v2563_v52 = vrot.slane %v2476_v34, 1  ;;  %2920 = vrot.lane.b32.xlu0 %v2612_v59, %s4071_s12  ;;  %v5019_v50 = vpop.permute.xlu1 %2762 }
 0x2f2   : > { %v1899_v2 = vand.u32 15, %v1797_v53 }
 0x2f3   : > { %v2611_v42 = vsel %vm2587_vm1, %v2562_v47, %v2563_v52 }
 0x2f4   : > { %v5024_v19 = vpop.permute.xlu0 %2764  ;;  %v2691_v35 = vsel %vm2402_vm7, %v2611_v42, 0.0  ;;  %vm2406_vm9 = vcmp.ne.s32.totalorder %v1899_v2, 15  ;;  %v1799_v42 = vadd.s32 104, %v4327_v56 }
 0x2f5   : > { %2922 = vrot.lane.b32.xlu1 %v2691_v35, %s4071_s12  ;;  %v2478_v48 = vpop.permute.xlu1 %2477 }
 0x2f6   : > { %v2564_v41 = vrot.slane %v2478_v48, 1 }
 0x2f8   : > { %v2480_v36 = vpop.permute.xlu0 %2479  ;;  %v2610_v16 = vsel %vm2587_vm1, %v2563_v52, %v2564_v41 }
 0x2f9   : > { %v2565_v51 = vrot.slane %v2480_v36, 1  ;;  %2924 = vrot.lane.b32.xlu0 %v2610_v16, %s4071_s12  ;;  %v5030_v57 = vpop.permute.xlu1 %2766  ;;  %v1913_v36 = vand.u32 15, %v1799_v42 }
 0x2fb   : > { %v2609_v62 = vsel %vm2587_vm1, %v2564_v41, %v2565_v51  ;;  %vm2408_vm10 = vcmp.ne.s32.totalorder %v1913_v36, 15 }
 0x2fc   : > { %v5035_v3 = vpop.permute.xlu0 %2768  ;;  %v2693_v25 = vsel %vm2404_vm8, %v2609_v62, 0.0 }
 0x2fd   : > { %2926 = vrot.lane.b32.xlu1 %v2693_v25, %s4071_s12  ;;  %v2482_v9 = vpop.permute.xlu1 %2481 }
 0x2fe   : > { %v2566_v47 = vrot.slane %v2482_v9, 1  ;;  %v1801_v9 = vadd.s32 120, %v4327_v56 }
 0x300   : > { %v2484_v34 = vpop.permute.xlu0 %2483  ;;  %v2608_v59 = vsel %vm2587_vm1, %v2565_v51, %v2566_v47  ;;  %v1927_v42 = vand.u32 15, %v1801_v9 }
 0x301   : > { %v2567_v52 = vrot.slane %v2484_v34, 1  ;;  %2928 = vrot.lane.b32.xlu0 %v2608_v59, %s4071_s12  ;;  %v5041_v20 = vpop.permute.xlu1 %2770 }
 0x302   : > { %vm2410_vm11 = vcmp.ne.s32.totalorder %v1927_v42, 15 }
 0x303   : > { %v2607_v35 = vsel %vm2587_vm1, %v2566_v47, %v2567_v52 }
 0x304   : > { %v5046_v48 = vpop.permute.xlu0 %2772  ;;  %v2695_v7 = vsel %vm2406_vm9, %v2607_v35, 0.0 }
 0x305   : > { %2930 = vrot.lane.b32.xlu1 %v2695_v7, %s4071_s12  ;;  %v2486_v41 = vpop.permute.xlu1 %2485 }
 0x306   : > { %v2568_v16 = vrot.slane %v2486_v41, 1 }
 0x308   : > { %v2488_v51 = vpop.permute.xlu0 %2487  ;;  %v2606_v53 = vsel %vm2587_vm1, %v2567_v52, %v2568_v16 }
 0x309   : > { %v2569_v62 = vrot.slane %v2488_v51, 1  ;;  %2932 = vrot.lane.b32.xlu0 %v2606_v53, %s4071_s12  ;;  %v5052_v25 = vpop.permute.xlu1 %2774 }
 0x30b   : > { %v2605_v2 = vsel %vm2587_vm1, %v2568_v16, %v2569_v62  ;;  %v1803_v16 = vadd.s32 136, %v4327_v56 }
 0x30c   : > { %v5057_v47 = vpop.permute.xlu0 %2776  ;;  %v2697_v34 = vsel %vm2408_vm10, %v2605_v2, 0.0 }
 0x30d   : > { %2934 = vrot.lane.b32.xlu1 %v2697_v34, %s4071_s12  ;;  %v2490_v59 = vpop.permute.xlu1 %2489  ;;  %v1941_v34 = vand.u32 15, %v1803_v16 }
 0x30e   : > { %v2570_v35 = vrot.slane %v2490_v59, 1 }
 0x30f   : > { %vm2412_vm12 = vcmp.ne.s32.totalorder %v1941_v34, 15 }
 0x310   : > { %v2492_v52 = vpop.permute.xlu0 %2491  ;;  %v2604_v7 = vsel %vm2587_vm1, %v2569_v62, %v2570_v35 }
 0x311   : > { %v2571_v41 = vrot.slane %v2492_v52, 1  ;;  %2936 = vrot.lane.b32.xlu0 %v2604_v7, %s4071_s12  ;;  %v5063_v36 = vpop.permute.xlu1 %2778 }
 0x313   : > { %v2603_v51 = vsel %vm2587_vm1, %v2570_v35, %v2571_v41  ;;  %v1805_v35 = vadd.s32 152, %v4327_v56 }
 0x314   : > { %v5068_v53 = vpop.permute.xlu0 %2780  ;;  %v2699_v2 = vsel %vm2410_vm11, %v2603_v51, 0.0 }
 0x315   : > { %2938 = vrot.lane.b32.xlu1 %v2699_v2, %s4071_s12  ;;  %v2494_v9 = vpop.permute.xlu1 %2493 }
 0x316   : > { %v2572_v59 = vrot.slane %v2494_v9, 1  ;;  %v1955_v9 = vand.u32 15, %v1805_v35 }
 0x318   : > { %v2496_v62 = vpop.permute.xlu0 %2495  ;;  %v2602_v52 = vsel %vm2587_vm1, %v2571_v41, %v2572_v59  ;;  %vm2414_vm13 = vcmp.ne.s32.totalorder %v1955_v9, 15 }
 0x319   : > { %v2573_v7 = vrot.slane %v2496_v62, 1  ;;  %2940 = vrot.lane.b32.xlu0 %v2602_v52, %s4071_s12  ;;  %v5074_v42 = vpop.permute.xlu1 %2782 }
 0x31b   : > { %v2601_v51 = vsel %vm2587_vm1, %v2572_v59, %v2573_v7  ;;  %v1807_v59 = vadd.s32 168, %v4327_v56 }
 0x31c   : > { %v5079_v45 = vpop.permute.xlu0 %2784  ;;  %v2701_v2 = vsel %vm2412_vm12, %v2601_v51, 0.0 }
 0x31d   : > { %2942 = vrot.lane.b32.xlu1 %v2701_v2, %s4071_s12  ;;  %v2498_v16 = vpop.permute.xlu1 %2497 }
 0x31e   : > { %v2574_v14 = vrot.slane %v2498_v16, 1  ;;  %v1969_v16 = vand.u32 15, %v1807_v59 }
 0x320   : > { %v2500_v41 = vpop.permute.xlu0 %2499  ;;  %v2600_v62 = vsel %vm2587_vm1, %v2573_v7, %v2574_v14  ;;  %vm2416_vm14 = vcmp.ne.s32.totalorder %v1969_v16, 15 }
 0x321   : > { %v2575_v52 = vrot.slane %v2500_v41, 1  ;;  %2944 = vrot.lane.b32.xlu0 %v2600_v62, %s4071_s12  ;;  %v5085_v34 = vpop.permute.xlu1 %2786 }
 0x323   : > { %v2599_v51 = vsel %vm2587_vm1, %v2574_v14, %v2575_v52  ;;  %v1809_v14 = vadd.s32 184, %v4327_v56 }
 0x324   : > { %v5090_v18 = vpop.permute.xlu0 %2788  ;;  %v2703_v2 = vsel %vm2414_vm13, %v2599_v51, 0.0 }
 0x325   : > { %2946 = vrot.lane.b32.xlu1 %v2703_v2, %s4071_s12  ;;  %v2502_v35 = vpop.permute.xlu1 %2501 }
 0x326   : > { %v2576_v21 = vrot.slane %v2502_v35, 1  ;;  %v1983_v35 = vand.u32 15, %v1809_v14 }
 0x328   : > { %v2504_v7 = vpop.permute.xlu0 %2503  ;;  %v2598_v41 = vsel %vm2587_vm1, %v2575_v52, %v2576_v21  ;;  %vm2418_vm15 = vcmp.ne.s32.totalorder %v1983_v35, 15 }
 0x329   : > { %v2577_v62 = vrot.slane %v2504_v7, 1  ;;  %2948 = vrot.lane.b32.xlu0 %v2598_v41, %s4071_s12  ;;  %v5096_v9 = vpop.permute.xlu1 %2790 }
 0x32b   : > { %v2597_v51 = vsel %vm2587_vm1, %v2576_v21, %v2577_v62  ;;  %v1811_v21 = vadd.s32 200, %v4327_v56 }
 0x32c   : > { %v5101_v10 = vpop.permute.xlu0 %2792  ;;  %v2705_v2 = vsel %vm2416_vm14, %v2597_v51, 0.0 }
 0x32d   : > { %2950 = vrot.lane.b32.xlu1 %v2705_v2, %s4071_s12  ;;  %v2506_v59 = vpop.permute.xlu1 %2505 }
 0x32e   : > { %v2578_v37 = vrot.slane %v2506_v59, 1  ;;  %v1997_v59 = vand.u32 15, %v1811_v21 }
 0x330   : > { %v2508_v52 = vpop.permute.xlu0 %2507  ;;  %v2596_v7 = vsel %vm2587_vm1, %v2577_v62, %v2578_v37  ;;  %vm2420_vm0 = vcmp.ne.s32.totalorder %v1997_v59, 15 }
 0x331   : > { %v2579_v41 = vrot.slane %v2508_v52, 1  ;;  %2952 = vrot.lane.b32.xlu0 %v2596_v7, %s4071_s12  ;;  %v5107_v16 = vpop.permute.xlu1 %2794 }
 0x332   : > { %5436 = vst [vmem:[#allocation14_spill] sm:$0xff] %v5107_v16 }
 0x333   : > { %v2595_v51 = vsel %vm2587_vm1, %v2578_v37, %v2579_v41  ;;  %v1813_v37 = vadd.s32 216, %v4327_v56 }
 0x334   : > { %v5112_v46 = vpop.permute.xlu0 %2796  ;;  %v2707_v2 = vsel %vm2418_vm15, %v2595_v51, 0.0 }
 0x335   : > { %5437 = vst [vmem:[#allocation15_spill] sm:$0xff] %v5112_v46  ;;  %2954 = vrot.lane.b32.xlu1 %v2707_v2, %s4071_s12  ;;  %v2510_v14 = vpop.permute.xlu1 %2509 }
 0x336   : > { %v2580_v58 = vrot.slane %v2510_v14, 1  ;;  %v2011_v14 = vand.u32 15, %v1813_v37 }
 0x338   : > { %v2512_v62 = vpop.permute.xlu0 %2511  ;;  %v2594_v52 = vsel %vm2587_vm1, %v2579_v41, %v2580_v58  ;;  %vm2422_vm3 = vcmp.ne.s32.totalorder %v2011_v14, 15 }
 0x339   : > { %v2581_v7 = vrot.slane %v2512_v62, 1  ;;  %2956 = vrot.lane.b32.xlu0 %v2594_v52, %s4071_s12  ;;  %v5118_v35 = vpop.permute.xlu1 %2798 }
 0x33a   : > { %5438 = vst [vmem:[#allocation16_spill] sm:$0xff] %v5118_v35 }
 0x33b   : > { %v2593_v51 = vsel %vm2587_vm1, %v2580_v58, %v2581_v7  ;;  %v1815_v58 = vadd.s32 232, %v4327_v56 }
 0x33c   : > { %v5123_v46 = vpop.permute.xlu0 %2800  ;;  %v2709_v2 = vsel %vm2420_vm0, %v2593_v51, 0.0 }
 0x33d   : > { %5439 = vst [vmem:[#allocation17_spill] sm:$0xff] %v5123_v46  ;;  %2958 = vrot.lane.b32.xlu1 %v2709_v2, %s4071_s12  ;;  %v2514_v21 = vpop.permute.xlu1 %2513 }
 0x33e   : > { %v2582_v30 = vrot.slane %v2514_v21, 1  ;;  %v2025_v21 = vand.u32 15, %v1815_v58 }
 0x340   : > { %v2516_v41 = vpop.permute.xlu0 %2515  ;;  %v2592_v62 = vsel %vm2587_vm1, %v2581_v7, %v2582_v30  ;;  %v1817_v7 = vadd.s32 248, %v4327_v56  ;;  %vm2424_vm4 = vcmp.ne.s32.totalorder %v2025_v21, 15 }
 0x341   : > { %v2583_v52 = vrot.slane %v2516_v41, 1  ;;  %2960 = vrot.lane.b32.xlu0 %v2592_v62, %s4071_s12  ;;  %v5129_v59 = vpop.permute.xlu1 %2802 }
 0x342   : > { %5440 = vst [vmem:[#allocation18_spill] sm:$0xff] %v5129_v59 }
 0x343   : > { %v2591_v51 = vsel %vm2587_vm1, %v2582_v30, %v2583_v52  ;;  %v2039_v30 = vand.u32 15, %v1817_v7 }
 0x344   : > { %v5134_v46 = vpop.permute.xlu0 %2804  ;;  %v2711_v2 = vsel %vm2422_vm3, %v2591_v51, 0.0 }
 0x345   : > { %5441 = vst [vmem:[#allocation19_spill] sm:$0xff] %v5134_v46  ;;  %2962 = vrot.lane.b32.xlu1 %v2711_v2, %s4071_s12  ;;  %v2518_v37 = vpop.permute.xlu1 %2517  ;;  %vm2426_vm5 = vcmp.ne.s32.totalorder %v2039_v30, 15 }
 0x346   : > { %v2584_v35 = vrot.slane %v2518_v37, 1 }
 0x348   : > { %v2520_v41 = vpop.permute.xlu0 %2519  ;;  %v2590_v62 = vsel %vm2587_vm1, %v2583_v52, %v2584_v35 }
 0x349   : > { %v2585_v14 = vrot.slane %v2520_v41, 1  ;;  %2964 = vrot.lane.b32.xlu0 %v2590_v62, %s4071_s12  ;;  %v5141_v59 = vpop.permute.xlu1 %2806  ;;  %v5442_v41 = vrot.slane %v4942_v12, 1  ;;  %v2846_v12 = vadd.f32 %v4980_v63, %v4685_v4 }
 0x34b   : > { %v2589_v51 = vsel %vm2587_vm1, %v2584_v35, %v2585_v14 }
 0x34c   : > { %v2909_v2 = vpop.permute.xlu0 %2908  ;;  %v2713_v46 = vsel %vm2424_vm4, %v2589_v51, 0.0 }
 0x34d   : > { %2966 = vrot.lane.b32.xlu1 %v2713_v46, %s4071_s12  ;;  %v2522_v58 = vpop.permute.xlu1 %2521  ;;  %v2845_v46 = vadd.f32 %v4954_v55, %v4669_v38 }
 0x34e   : > { %v2586_v37 = vrot.slane %v2522_v58, 1  ;;  %v2847_v58 = vadd.f32 %v4992_v43, %v4689_v13  ;;  %v2849_v43 = vadd.f32 %v5007_v8, %v4706_v11  ;;  %v2851_v11 = vadd.f32 %v5019_v50, %v4724_v0 }
 0x34f   : > { %v2853_v0 = vadd.f32 %v5030_v57, %v4744_v6  ;;  %v2855_v6 = vadd.f32 %v5041_v20, %v4762_v54  ;;  %v2857_v54 = vadd.f32 %v5052_v25, %v4782_v31  ;;  %v2859_v31 = vadd.f32 %v5063_v36, %v4800_v39 }
 0x350   : > { %v5146_v16 = vpop.permute.xlu0 %2808  ;;  %v2588_v52 = vsel %vm2587_vm1, %v2585_v14, %v2586_v37  ;;  %v2619_v21 = vsel %vm2587_vm1, %v2586_v37, %v5442_v41  ;;  %v2861_v39 = vadd.f32 %v5074_v42, %v4820_v32  ;;  %v2863_v32 = vadd.f32 %v5085_v34, %v4838_v40 }
 0x351   : > { %2968 = vrot.lane.b32.xlu0 %v2588_v52, %s4071_s12  ;;  %v5155_v35 = vpop.permute.xlu1 %2810  ;;  %v2715_v7 = vsel %vm2426_vm5, %v2619_v21, 0.0  ;;  %v2865_v40 = vadd.f32 %v5096_v9, %v4858_v17  ;;  %vm3237_vm1 = vcmask 261120  }
 0x352   : > { %2970 = vrot.lane.b32.xlu1 %v2715_v7, %s4071_s12 }
 0x354   : > { %v2749_v62 = vpop.permute.xlu0 %2748 }
 0x355   : > { %v2844_v30 = vadd.f32 %v2749_v62, %v4666_v29  ;;  %v2911_v51 = vpop.permute.xlu1 %2910  ;;  %v2848_v29 = vadd.f32 %v4999_v23, %v4701_v49 }
 0x356   : > { %v3005_v14 = vadd.f32 %v2911_v51, %v2845_v46 }
 0x357   : > { %v3004_v56 = vadd.f32 %v2909_v2, %v2844_v30 }
 0x358   : > { %v3046_v37 = vadd.f32 %v4925_v61, %v3005_v14  ;;  %v2913_v52 = vpop.permute.xlu0 %2912  ;;  %v2850_v14 = vadd.f32 %v5013_v1, %v4720_v60  ;;  %v2852_v60 = vadd.f32 %v5024_v19, %v4739_v15  ;;  %v2854_v15 = vadd.f32 %v5035_v3, %v4758_v44 }
 0x359   : > { %v3006_v41 = vadd.f32 %v2913_v52, %v2846_v12  ;;  %v2915_v21 = vpop.permute.xlu1 %2914  ;;  %v3045_v7 = vadd.f32 %v4925_v61, %v3004_v56  ;;  %v2856_v44 = vadd.f32 %v5046_v48, %v4777_v27  ;;  %v2858_v27 = vadd.f32 %v5057_v47, %v4796_v28 }
 0x35a   : > { %v3078_v38 = vmax.f32 %v3046_v37, 0.0  ;;  %v3007_v55 = vadd.f32 %v2915_v21, %v2847_v58  ;;  %v2860_v28 = vadd.f32 %v5068_v53, %v4815_v33  ;;  %v2862_v33 = vadd.f32 %v5079_v45, %v4834_v22 }
 0x35b   : > { %v3047_v46 = vadd.f32 %v4925_v61, %v3006_v41  ;;  %v3077_v62 = vmax.f32 %v3045_v7, 0.0  ;;  %v2864_v22 = vadd.f32 %v5090_v18, %v4853_v5  ;;  %v2866_v5 = vadd.f32 %v5101_v10, %v4872_v24 }
 0x35c   : > { %v3048_v4 = vadd.f32 %v4925_v61, %v3007_v55  ;;  %v2917_v63 = vpop.permute.xlu0 %2916  ;;  %3143 = vrot.lane.b32.xlu0 %v3078_v38, %s4073_s15 }
 0x35d   : > { %v3008_v13 = vadd.f32 %v2917_v63, %v2848_v29  ;;  %3141 = vrot.lane.b32.xlu1 %v3077_v62, %s4073_s15  ;;  %v3079_v30 = vmax.f32 %v3047_v46, 0.0 }
 0x35e   : > { %v3080_v2 = vmax.f32 %v3048_v4, 0.0 }
 0x35f   : > { %v3049_v51 = vadd.f32 %v4925_v61, %v3008_v13  ;;  %v2919_v49 = vpop.permute.xlu1 %2918 }
 0x360   : > { %v3009_v23 = vadd.f32 %v2919_v49, %v2849_v43  ;;  %3147 = vrot.lane.b32.xlu0 %v3080_v2, %s4073_s15 }
 0x361   : > { %3145 = vrot.lane.b32.xlu1 %v3079_v30, %s4073_s15  ;;  %v3081_v56 = vmax.f32 %v3049_v51, 0.0 }
 0x362   : > { %v3050_v12 = vadd.f32 %v4925_v61, %v3009_v23 }
 0x363   : > { %v2921_v58 = vpop.permute.xlu0 %2920 }
 0x364   : > { %v3082_v37 = vmax.f32 %v3050_v12, 0.0  ;;  %v3010_v52 = vadd.f32 %v2921_v58, %v2850_v14 }
 0x365   : > { %3149 = vrot.lane.b32.xlu1 %v3081_v56, %s4073_s15 }
 0x366   : > { %v3051_v8 = vadd.f32 %v4925_v61, %v3010_v52  ;;  %3151 = vrot.lane.b32.xlu0 %v3082_v37, %s4073_s15 }
 0x367   : > { %v2923_v41 = vpop.permute.xlu1 %2922 }
 0x368   : > { %v3083_v21 = vmax.f32 %v3051_v8, 0.0  ;;  %v3011_v7 = vadd.f32 %v2923_v41, %v2851_v11 }
 0x36a   : > { %v3052_v1 = vadd.f32 %v4925_v61, %v3011_v7  ;;  %3153 = vrot.lane.b32.xlu1 %v3083_v21, %s4073_s15 }
 0x36b   : > { %v2925_v38 = vpop.permute.xlu0 %2924 }
 0x36c   : > { %v3084_v55 = vmax.f32 %v3052_v1, 0.0  ;;  %v3012_v29 = vadd.f32 %v2925_v38, %v2852_v60 }
 0x36e   : > { %v3053_v50 = vadd.f32 %v4925_v61, %v3012_v29  ;;  %3155 = vrot.lane.b32.xlu0 %v3084_v55, %s4073_s15 }
 0x36f   : > { %v2927_v46 = vpop.permute.xlu1 %2926 }
 0x370   : > { %v3085_v62 = vmax.f32 %v3053_v50, 0.0  ;;  %v3013_v4 = vadd.f32 %v2927_v46, %v2853_v0 }
 0x372   : > { %v3054_v19 = vadd.f32 %v4925_v61, %v3013_v4  ;;  %3157 = vrot.lane.b32.xlu1 %v3085_v62, %s4073_s15 }
 0x373   : > { %v2929_v63 = vpop.permute.xlu0 %2928 }
 0x374   : > { %v3086_v13 = vmax.f32 %v3054_v19, 0.0  ;;  %v3014_v43 = vadd.f32 %v2929_v63, %v2854_v15 }
 0x376   : > { %v3055_v57 = vadd.f32 %v4925_v61, %v3014_v43  ;;  %3159 = vrot.lane.b32.xlu0 %v3086_v13, %s4073_s15 }
 0x377   : > { %v2931_v2 = vpop.permute.xlu1 %2930 }
 0x378   : > { %v3087_v30 = vmax.f32 %v3055_v57, 0.0  ;;  %v3015_v51 = vadd.f32 %v2931_v2, %v2855_v6 }
 0x37a   : > { %v3056_v3 = vadd.f32 %v4925_v61, %v3015_v51  ;;  %3161 = vrot.lane.b32.xlu1 %v3087_v30, %s4073_s15 }
 0x37b   : > { %v2933_v49 = vpop.permute.xlu0 %2932 }
 0x37c   : > { %v3088_v23 = vmax.f32 %v3056_v3, 0.0  ;;  %v3016_v14 = vadd.f32 %v2933_v49, %v2856_v44  ;;  %v5443_v44 = vld [vmem:[#allocation14_spill] sm:$0xff] }
 0x37d   : > { %v2867_v17 = vadd.f32 %v5443_v44, %v4876_v26 }
 0x37e   : > { %v3057_v20 = vadd.f32 %v4925_v61, %v3016_v14  ;;  %3163 = vrot.lane.b32.xlu0 %v3088_v23, %s4073_s15  ;;  %v5444_v14 = vld [vmem:[#allocation6_spill] sm:$0xff] }
 0x37f   : > { %v2935_v12 = vpop.permute.xlu1 %2934 }
 0x380   : > { %v3089_v56 = vmax.f32 %v3057_v20, 0.0  ;;  %v3017_v58 = vadd.f32 %v2935_v12, %v2857_v54  ;;  %v5445_v54 = vld [vmem:[#allocation15_spill] sm:$0xff] }
 0x381   : > { %v2868_v24 = vadd.f32 %v5445_v54, %v5444_v14 }
 0x382   : > { %v3058_v48 = vadd.f32 %v4925_v61, %v3017_v58  ;;  %3165 = vrot.lane.b32.xlu1 %v3089_v56, %s4073_s15  ;;  %v5446_v58 = vld [vmem:[#allocation7_spill] sm:$0xff] }
 0x383   : > { %v2937_v37 = vpop.permute.xlu0 %2936 }
 0x384   : > { %v3090_v52 = vmax.f32 %v3058_v48, 0.0  ;;  %v3018_v11 = vadd.f32 %v2937_v37, %v2858_v27  ;;  %v5447_v27 = vld [vmem:[#allocation16_spill] sm:$0xff] }
 0x385   : > { %v2869_v26 = vadd.f32 %v5447_v27, %v5446_v58 }
 0x386   : > { %v3059_v25 = vadd.f32 %v4925_v61, %v3018_v11  ;;  %3167 = vrot.lane.b32.xlu0 %v3090_v52, %s4073_s15 }
 0x387   : > { %v2939_v8 = vpop.permute.xlu1 %2938 }
 0x388   : > { %v3091_v41 = vmax.f32 %v3059_v25, 0.0  ;;  %v3019_v21 = vadd.f32 %v2939_v8, %v2859_v31  ;;  %v5448_v31 = vld [vmem:[#allocation8_spill] sm:$0xff]  ;;  %v5449_v25 = vld [vmem:[#allocation17_spill] sm:$0xff] }
 0x389   : > { %v2870_v8 = vadd.f32 %v5449_v25, %v5448_v31 }
 0x38a   : > { %v3060_v47 = vadd.f32 %v4925_v61, %v3019_v21  ;;  %3169 = vrot.lane.b32.xlu1 %v3091_v41, %s4073_s15 }
 0x38b   : > { %v2941_v7 = vpop.permute.xlu0 %2940 }
 0x38c   : > { %v3092_v60 = vmax.f32 %v3060_v47, 0.0  ;;  %v3020_v1 = vadd.f32 %v2941_v7, %v2860_v28  ;;  %v5450_v7 = vld [vmem:[#allocation9_spill] sm:$0xff] }
 0x38e   : > { %v3061_v36 = vadd.f32 %v4925_v61, %v3020_v1  ;;  %3171 = vrot.lane.b32.xlu0 %v3092_v60, %s4073_s15  ;;  %v5451_v60 = vld [vmem:[#allocation18_spill] sm:$0xff] }
 0x38f   : > { %v2943_v38 = vpop.permute.xlu1 %2942  ;;  %v2871_v1 = vadd.f32 %v5451_v60, %v5450_v7 }
 0x390   : > { %v3093_v55 = vmax.f32 %v3061_v36, 0.0  ;;  %v3021_v29 = vadd.f32 %v2943_v38, %v2861_v39 }
 0x392   : > { %v3062_v53 = vadd.f32 %v4925_v61, %v3021_v29  ;;  %3173 = vrot.lane.b32.xlu1 %v3093_v55, %s4073_s15  ;;  %v5452_v29 = vld [vmem:[#allocation10_spill] sm:$0xff] }
 0x393   : > { %v2945_v0 = vpop.permute.xlu0 %2944 }
 0x394   : > { %v3094_v50 = vmax.f32 %v3062_v53, 0.0  ;;  %v3022_v46 = vadd.f32 %v2945_v0, %v2862_v33  ;;  %v5453_v33 = vld [vmem:[#allocation19_spill] sm:$0xff] }
 0x395   : > { %v2872_v53 = vadd.f32 %v5453_v33, %v5452_v29 }
 0x396   : > { %v3063_v42 = vadd.f32 %v4925_v61, %v3022_v46  ;;  %3175 = vrot.lane.b32.xlu0 %v3094_v50, %s4073_s15 }
 0x397   : > { %v2947_v62 = vpop.permute.xlu1 %2946 }
 0x398   : > { %v3095_v4 = vmax.f32 %v3063_v42, 0.0  ;;  %v3023_v15 = vadd.f32 %v2947_v62, %v2863_v32  ;;  %v5454_v42 = vld [vmem:[#allocation11_spill] sm:$0xff] }
 0x399   : > { %v2873_v62 = vadd.f32 %v5141_v59, %v5454_v42 }
 0x39a   : > { %v3064_v45 = vadd.f32 %v4925_v61, %v3023_v15  ;;  %3177 = vrot.lane.b32.xlu1 %v3095_v4, %s4073_s15 }
 0x39b   : > { %v2949_v19 = vpop.permute.xlu0 %2948 }
 0x39c   : > { %v3096_v63 = vmax.f32 %v3064_v45, 0.0  ;;  %v3024_v13 = vadd.f32 %v2949_v19, %v2864_v22  ;;  %v5455_v19 = vld [vmem:[#allocation12_spill] sm:$0xff] }
 0x39e   : > { %v3065_v34 = vadd.f32 %v4925_v61, %v3024_v13  ;;  %3179 = vrot.lane.b32.xlu0 %v3096_v63, %s4073_s15  ;;  %v2874_v63 = vadd.f32 %v5146_v16, %v5455_v19 }
 0x39f   : > { %v2951_v43 = vpop.permute.xlu1 %2950 }
 0x3a0   : > { %v3097_v6 = vmax.f32 %v3065_v34, 0.0  ;;  %v3025_v57 = vadd.f32 %v2951_v43, %v2865_v40  ;;  %v5456_v40 = vld [vmem:[#allocation13_spill] sm:$0xff] }
 0x3a1   : > { %v2875_v34 = vadd.f32 %v5155_v35, %v5456_v40 }
 0x3a2   : > { %v3066_v18 = vadd.f32 %v4925_v61, %v3025_v57  ;;  %3181 = vrot.lane.b32.xlu1 %v3097_v6, %s4073_s15 }
 0x3a3   : > { %v2953_v2 = vpop.permute.xlu0 %2952 }
 0x3a4   : > { %v3098_v30 = vmax.f32 %v3066_v18, 0.0  ;;  %v3026_v51 = vadd.f32 %v2953_v2, %v2866_v5 }
 0x3a6   : > { %v3067_v9 = vadd.f32 %v4925_v61, %v3026_v51  ;;  %3183 = vrot.lane.b32.xlu0 %v3098_v30, %s4073_s15 }
 0x3a7   : > { %v2955_v3 = vpop.permute.xlu1 %2954 }
 0x3a8   : > { %v3099_v49 = vmax.f32 %v3067_v9, 0.0  ;;  %v3027_v23 = vadd.f32 %v2955_v3, %v2867_v17 }
 0x3aa   : > { %v3068_v10 = vadd.f32 %v4925_v61, %v3027_v23  ;;  %3185 = vrot.lane.b32.xlu1 %v3099_v49, %s4073_s15 }
 0x3ab   : > { %v2957_v20 = vpop.permute.xlu0 %2956 }
 0x3ac   : > { %v3100_v12 = vmax.f32 %v3068_v10, 0.0  ;;  %v3028_v56 = vadd.f32 %v2957_v20, %v2868_v24 }
 0x3ae   : > { %v3069_v48 = vadd.f32 %v4925_v61, %v3028_v56  ;;  %3187 = vrot.lane.b32.xlu0 %v3100_v12, %s4073_s15 }
 0x3af   : > { %v2959_v37 = vpop.permute.xlu1 %2958 }
 0x3b0   : > { %v3101_v52 = vmax.f32 %v3069_v48, 0.0  ;;  %v3029_v11 = vadd.f32 %v2959_v37, %v2869_v26 }
 0x3b2   : > { %v3070_v41 = vadd.f32 %v4925_v61, %v3029_v11  ;;  %3189 = vrot.lane.b32.xlu1 %v3101_v52, %s4073_s15 }
 0x3b3   : > { %v2961_v21 = vpop.permute.xlu0 %2960 }
 0x3b4   : > { %v3102_v28 = vmax.f32 %v3070_v41, 0.0  ;;  %v3030_v47 = vadd.f32 %v2961_v21, %v2870_v8 }
 0x3b6   : > { %v3071_v39 = vadd.f32 %v4925_v61, %v3030_v47  ;;  %3191 = vrot.lane.b32.xlu0 %v3102_v28, %s4073_s15 }
 0x3b7   : > { %v2963_v36 = vpop.permute.xlu1 %2962 }
 0x3b8   : > { %v3103_v38 = vmax.f32 %v3071_v39, 0.0  ;;  %v3031_v55 = vadd.f32 %v2963_v36, %v2871_v1 }
 0x3ba   : > { %v3072_v0 = vadd.f32 %v4925_v61, %v3031_v55  ;;  %3193 = vrot.lane.b32.xlu1 %v3103_v38, %s4073_s15 }
 0x3bb   : > { %v2965_v50 = vpop.permute.xlu0 %2964 }
 0x3bc   : > { %v3104_v46 = vmax.f32 %v3072_v0, 0.0  ;;  %v3032_v32 = vadd.f32 %v2965_v50, %v2872_v53 }
 0x3be   : > { %v3073_v4 = vadd.f32 %v4925_v61, %v3032_v32  ;;  %3195 = vrot.lane.b32.xlu0 %v3104_v46, %s4073_s15 }
 0x3bf   : > { %v2967_v15 = vpop.permute.xlu1 %2966 }
 0x3c0   : > { %v3105_v22 = vmax.f32 %v3073_v4, 0.0  ;;  %v3033_v45 = vadd.f32 %v2967_v15, %v2873_v62 }
 0x3c2   : > { %v3074_v13 = vadd.f32 %v4925_v61, %v3033_v45  ;;  %3197 = vrot.lane.b32.xlu1 %v3105_v22, %s4073_s15 }
 0x3c3   : > { %v2969_v59 = vpop.permute.xlu0 %2968 }
 0x3c4   : > { %v3106_v43 = vmax.f32 %v3074_v13, 0.0  ;;  %v3034_v6 = vadd.f32 %v2969_v59, %v2874_v63  ;;  %v2971_v57 = vpop.permute.xlu1 %2970 }
 0x3c5   : > { %v3035_v5 = vadd.f32 %v2971_v57, %v2875_v34 }
 0x3c6   : > { %v3075_v18 = vadd.f32 %v4925_v61, %v3034_v6  ;;  %3199 = vrot.lane.b32.xlu0 %v3106_v43, %s4073_s15 }
 0x3c7   : > { %v3076_v2 = vadd.f32 %v4925_v61, %v3035_v5 }
 0x3c8   : > { %v3107_v16 = vmax.f32 %v3075_v18, 0.0 }
 0x3c9   : > { %v3108_v30 = vmax.f32 %v3076_v2, 0.0 }
 0x3ca   : > { %3201 = vrot.lane.b32.xlu1 %v3107_v16, %s4073_s15 }
 0x3cb   : > { %3203 = vrot.lane.b32.xlu0 %v3108_v30, %s4073_s15 }
 0x3ce   : > { %v3144_v35 = vpop.permute.xlu0 %3143 }
 0x3cf   : > { %3239 = vst.msk [vmem:[%s5288_s24 + $0x8] sm:$0xff] %vm3237_vm1, %v3144_v35  ;;  %v3142_v61 = vpop.permute.xlu1 %3141 }
 0x3d0   : > { %3238 = vst.msk [vmem:[%s5288_s24] sm:$0xff] %vm3237_vm1, %v3142_v61 }
 0x3d2   : > { %v3148_v51 = vpop.permute.xlu0 %3147 }
 0x3d3   : > { %3241 = vst.msk [vmem:[%s5288_s24 + $0x18] sm:$0xff] %vm3237_vm1, %v3148_v51  ;;  %v3146_v44 = vpop.permute.xlu1 %3145 }
 0x3d4   : > { %3240 = vst.msk [vmem:[%s5288_s24 + $0x10] sm:$0xff] %vm3237_vm1, %v3146_v44 }
 0x3d7   : > { %v3150_v17 = vpop.permute.xlu1 %3149 }
 0x3d8   : > { %3242 = vst.msk [vmem:[%s5288_s24 + $0x20] sm:$0xff] %vm3237_vm1, %v3150_v17  ;;  %v3152_v9 = vpop.permute.xlu0 %3151 }
 0x3d9   : > { %3243 = vst.msk [vmem:[%s5288_s24 + $0x28] sm:$0xff] %vm3237_vm1, %v3152_v9 }
 0x3dc   : > { %v3154_v3 = vpop.permute.xlu1 %3153 }
 0x3dd   : > { %3244 = vst.msk [vmem:[%s5288_s24 + $0x30] sm:$0xff] %vm3237_vm1, %v3154_v3 }
 0x3e0   : > { %v3156_v49 = vpop.permute.xlu0 %3155 }
 0x3e1   : > { %3245 = vst.msk [vmem:[%s5288_s24 + $0x38] sm:$0xff] %vm3237_vm1, %v3156_v49 }
 0x3e4   : > { %v3158_v23 = vpop.permute.xlu1 %3157 }
 0x3e5   : > { %3246 = vst.msk [vmem:[%s5288_s24 + $0x40] sm:$0xff] %vm3237_vm1, %v3158_v23 }
 0x3e8   : > { %v3160_v14 = vpop.permute.xlu0 %3159 }
 0x3e9   : > { %3247 = vst.msk [vmem:[%s5288_s24 + $0x48] sm:$0xff] %vm3237_vm1, %v3160_v14 }
 0x3ec   : > { %v3162_v54 = vpop.permute.xlu1 %3161 }
 0x3ed   : > { %3248 = vst.msk [vmem:[%s5288_s24 + $0x50] sm:$0xff] %vm3237_vm1, %v3162_v54 }
 0x3f0   : > { %v3164_v24 = vpop.permute.xlu0 %3163 }
 0x3f1   : > { %3249 = vst.msk [vmem:[%s5288_s24 + $0x58] sm:$0xff] %vm3237_vm1, %v3164_v24 }
 0x3f4   : > { %v3166_v10 = vpop.permute.xlu1 %3165 }
 0x3f5   : > { %3250 = vst.msk [vmem:[%s5288_s24 + $0x60] sm:$0xff] %vm3237_vm1, %v3166_v10 }
 0x3f8   : > { %v3168_v20 = vpop.permute.xlu0 %3167 }
 0x3f9   : > { %3251 = vst.msk [vmem:[%s5288_s24 + $0x68] sm:$0xff] %vm3237_vm1, %v3168_v20 }
 0x3fc   : > { %v3170_v12 = vpop.permute.xlu1 %3169 }
 0x3fd   : > { %3252 = vst.msk [vmem:[%s5288_s24 + $0x70] sm:$0xff] %vm3237_vm1, %v3170_v12 }
 0x400   : > { %v3172_v56 = vpop.permute.xlu0 %3171 }
 0x401   : > { %3253 = vst.msk [vmem:[%s5288_s24 + $0x78] sm:$0xff] %vm3237_vm1, %v3172_v56 }
 0x404   : > { %v3174_v58 = vpop.permute.xlu1 %3173 }
 0x405   : > { %3254 = vst.msk [vmem:[%s5288_s24 + $0x80] sm:$0xff] %vm3237_vm1, %v3174_v58 }
 0x408   : > { %v3176_v27 = vpop.permute.xlu0 %3175 }
 0x409   : > { %3255 = vst.msk [vmem:[%s5288_s24 + $0x88] sm:$0xff] %vm3237_vm1, %v3176_v27 }
 0x40c   : > { %v3178_v26 = vpop.permute.xlu1 %3177 }
 0x40d   : > { %3256 = vst.msk [vmem:[%s5288_s24 + $0x90] sm:$0xff] %vm3237_vm1, %v3178_v26 }
 0x410   : > { %v3180_v48 = vpop.permute.xlu0 %3179 }
 0x411   : > { %3257 = vst.msk [vmem:[%s5288_s24 + $0x98] sm:$0xff] %vm3237_vm1, %v3180_v48 }
 0x414   : > { %v3182_v37 = vpop.permute.xlu1 %3181 }
 0x415   : > { %3258 = vst.msk [vmem:[%s5288_s24 + $0xa0] sm:$0xff] %vm3237_vm1, %v3182_v37 }
 0x418   : > { %v3184_v52 = vpop.permute.xlu0 %3183 }
 0x419   : > { %3259 = vst.msk [vmem:[%s5288_s24 + $0xa8] sm:$0xff] %vm3237_vm1, %v3184_v52 }
 0x41c   : > { %v3186_v11 = vpop.permute.xlu1 %3185 }
 0x41d   : > { %3260 = vst.msk [vmem:[%s5288_s24 + $0xb0] sm:$0xff] %vm3237_vm1, %v3186_v11 }
 0x420   : > { %v3188_v31 = vpop.permute.xlu0 %3187 }
 0x421   : > { %3261 = vst.msk [vmem:[%s5288_s24 + $0xb8] sm:$0xff] %vm3237_vm1, %v3188_v31 }
 0x424   : > { %v3190_v25 = vpop.permute.xlu1 %3189 }
 0x425   : > { %3262 = vst.msk [vmem:[%s5288_s24 + $0xc0] sm:$0xff] %vm3237_vm1, %v3190_v25 }
 0x428   : > { %v3192_v8 = vpop.permute.xlu0 %3191 }
 0x429   : > { %3263 = vst.msk [vmem:[%s5288_s24 + $0xc8] sm:$0xff] %vm3237_vm1, %v3192_v8 }
 0x42c   : > { %v3194_v41 = vpop.permute.xlu1 %3193 }
 0x42d   : > { %3264 = vst.msk [vmem:[%s5288_s24 + $0xd0] sm:$0xff] %vm3237_vm1, %v3194_v41 }
 0x430   : > { %v3196_v21 = vpop.permute.xlu0 %3195 }
 0x431   : > { %3265 = vst.msk [vmem:[%s5288_s24 + $0xd8] sm:$0xff] %vm3237_vm1, %v3196_v21 }
 0x434   : > { %v3198_v28 = vpop.permute.xlu1 %3197 }
 0x435   : > { %3266 = vst.msk [vmem:[%s5288_s24 + $0xe0] sm:$0xff] %vm3237_vm1, %v3198_v28 }
 0x438   : > { %v3200_v47 = vpop.permute.xlu0 %3199 }
 0x439   : > { %3267 = vst.msk [vmem:[%s5288_s24 + $0xe8] sm:$0xff] %vm3237_vm1, %v3200_v47 }
 0x43c   : > { %v3202_v7 = vpop.permute.xlu1 %3201 }
 0x43d   : > { %3268 = vst.msk [vmem:[%s5288_s24 + $0xf0] sm:$0xff] %vm3237_vm1, %v3202_v7  ;;  %v3204_v60 = vpop.permute.xlu0 %3203 }
 0x43e   : > { %3269 = vst.msk [vmem:[%s5288_s24 + $0xf8] sm:$0xff] %vm3237_vm1, %v3204_v60 }
 0x43f   : > { %4003 = shalt.err (!%p4000_p5)
}
 0x440   : > { %s4004_s12 = scalar_lea.hbm %s5355_s8, 4096  ;;  %s4008_s16 = scalar_lea.hbm %s5416_s5, 8192 }
 0x441   : > { %p4005_p6 = scmp.ne.s32.totalorder %s5355_s8, %s4004_s12  ;;  %p4009_p10 = scmp.lt.u32.totalorder %s5355_s8, %s5416_s5 }
 0x442   : > { %p4010_p11 = scmp.lt.u32.totalorder %s4008_s16, %s4004_s12  ;;  %p4012_p13 = scmp.lt.u32.totalorder %s4004_s12, %s5355_s8 }
 0x443   : > { %p4006_p7 = pnand %p4005_p6, %p4147_p4 }
 0x444   : > { %p4011_p12 = por %p4010_p11, %p4009_p10 }
 0x445   : > { %p4007_p9 = pneg %p4006_p7 }
 0x446   : > { %p4013_p0 = por %p4012_p13, %p4011_p12 }
 0x448   : > { %p4014_p1 = pnand %p4013_p0, %p4007_p9 }
 0x44a   : > { %4017 = shalt.err (!%p4014_p1)
}
 0x44b   : > { %s4075_s25 = smov 128   ;;  %s4076_s29 = smov 8  }
 0x44c   : > { %3863 = dma.vmem_to_hbm [thread:$0]  (%p4147_p4), %s5357_s27, 4096, %s5355_s8, %s5365_s21, %s4075_s25, %s4075_s25, %s4076_s29  }
 0x44d PF: > { %p3869_p2 = scmp.ge.s32.totalorder %s4068_s23, 2  ;;  %s3302_s7 = sand.u32 1, %s4048_s18  }
 0x44e   : > { %s3303_s9 = scalar_lea.sflag [#allocation4], %s3302_s7 }
 0x44f   : > { %p3866_p3 = pnand %p3869_p2, %p4154_p8 }
 0x451   : > { %4043 = dma.done.wait (!%p3866_p3), %s3303_s9, 4096  }
 0x452   : > { %4045 = vsyncadd (!%p3866_p3), %s3303_s9, 4294963200  ;;  %s18_s23 = sadd.s32 1, %s4068_s23   ;;  %s5457_s18 = smov %s4052_s19 }
 0x453   : > { %p15_p5 = scmp.ge.s32.totalorder %s18_s23, 4   ;;  %s5458_s19 = smov %s4056_s20 }
 0x454   : > { %s5459_s20 = smov %s4160_s6  ;;  %s5460_s21 = smov %s4064_s22 }
 0x455   : > { %s5461_s22 = smov %s5463_s26  ;;  %17 = sbr.rel (!%p15_p5) target bundleno = 4 (0x4), region = 82 }
 0x45c   :  { %3308 = vsyncpa [#allocation4], 1 }
 0x45d   :  { %3310 = vsyncpa [#allocation4 + $0x1], 1 }

</bundles_post_ra>
